<compile_context>
chip_gen: v7x
topology: tpu7x:2x2x1
jax: 0.10.0
libtpu: 0.0.40
codegen_flags: <defaults>
</compile_context>

<pallas_src>
import math
from functools import partial

import jax
import jax.numpy as jnp
from jax import lax
from jax.experimental import pallas as pl
from jax.experimental.pallas import tpu as pltpu

_INV_SQRT2 = 0.7071067811865476
_LN_EPS = 1e-5  # PyTorch nn.LayerNorm default


def _layernorm(v, gamma, beta):
    mu = jnp.mean(v, axis=-1, keepdims=True)
    var = jnp.mean((v - mu) ** 2, axis=-1, keepdims=True)
    return (v - mu) * lax.rsqrt(var + _LN_EPS) * gamma + beta


def block_kernel(x_ref,
                 n1_g_ref, n1_b_ref,
                 wq_ref, wk_ref, wv_ref,        # (heads, C, hd) bf16, scale folded into wq
                 wproj_ref, bproj_ref,          # (heads, hd, C) bf16, (1, C) f32
                 n2_g_ref, n2_b_ref,
                 w1_ref, b1_ref,                # (C, H) bf16, (1, H) f32
                 w2_ref, b2_ref,                # (H, C) bf16, (1, C) f32
                 o_ref,
                 *, num_heads):
    x = x_ref[0]                                # (N, C) f32 tokens for this batch element
    N, C = x.shape

    # ---------------- attention branch: x + proj(softmax(q k^T * scale) v) ----------------
    h = _layernorm(x, n1_g_ref[...], n1_b_ref[...])
    hb = h.astype(jnp.bfloat16)                 # bf16 into the MXU, f32 accumulate

    attn_out = jnp.zeros((N, C), jnp.float32)
    for hi in range(num_heads):                 # static unroll; per-head weight tiles, no slicing/concat
        q = jnp.dot(hb, wq_ref[hi], preferred_element_type=jnp.float32)   # (N, hd); scale pre-folded
        k = jnp.dot(hb, wk_ref[hi], preferred_element_type=jnp.float32)   # (N, hd)
        v = jnp.dot(hb, wv_ref[hi], preferred_element_type=jnp.float32)   # (N, hd)

        # q @ k^T without an explicit transpose: contract last dims of both operands.
        s = lax.dot_general(q.astype(jnp.bfloat16), k.astype(jnp.bfloat16),
                            dimension_numbers=(((1,), (1,)), ((), ())),
                            preferred_element_type=jnp.float32)            # (N, N)
        s = s - jnp.max(s, axis=-1, keepdims=True)
        p = jnp.exp(s)
        p = p * pl.reciprocal(jnp.sum(p, axis=-1, keepdims=True), approx=True)

        ctx = jnp.dot(p.astype(jnp.bfloat16), v.astype(jnp.bfloat16),
                      preferred_element_type=jnp.float32)                  # (N, hd)
        # per-head slice of the output projection; accumulate instead of concatenating heads
        attn_out = attn_out + jnp.dot(ctx.astype(jnp.bfloat16), wproj_ref[hi],
                                      preferred_element_type=jnp.float32)  # (N, C)

    x = x + attn_out + bproj_ref[...]

    # ---------------- MLP branch: x + fc2(gelu(fc1(x))) ----------------
    h = _layernorm(x, n2_g_ref[...], n2_b_ref[...]).astype(jnp.bfloat16)
    m = jnp.dot(h, w1_ref[...], preferred_element_type=jnp.float32) + b1_ref[...]
    # exact (erf-based) GELU, matching torch.nn.GELU default
    m = 0.5 * m * (1.0 + lax.erf(m * _INV_SQRT2))
    m = jnp.dot(m.astype(jnp.bfloat16), w2_ref[...],
                preferred_element_type=jnp.float32) + b2_ref[...]

    o_ref[0] = (x + m).astype(o_ref.dtype)


def vit_block(x, params, num_heads):
    B, N, C = x.shape
    H = params["w1"].shape[1]
    hd = C // num_heads
    scale = hd ** -0.5

    # ---- one-time param repacking (outside the kernel) ----
    wqkv = params["wqkv"]                                  # (C, 3C), columns = [q | k | v]
    def split_heads(w):                                    # (C, C) -> (heads, C, hd)
        return jnp.transpose(w.reshape(C, num_heads, hd), (1, 0, 2))
    wq = split_heads(wqkv[:, 0 * C:1 * C] * scale).astype(jnp.bfloat16)   # scale folded into q
    wk = split_heads(wqkv[:, 1 * C:2 * C]).astype(jnp.bfloat16)
    wv = split_heads(wqkv[:, 2 * C:3 * C]).astype(jnp.bfloat16)
    wproj = params["wproj"].reshape(num_heads, hd, C).astype(jnp.bfloat16)  # rows split per head
    w1 = params["w1"].astype(jnp.bfloat16)
    w2 = params["w2"].astype(jnp.bfloat16)

    def full_spec(shape):
        return pl.BlockSpec(shape, lambda b, _n=len(shape): (0,) * _n)

    kernel = partial(block_kernel, num_heads=num_heads)
    return pl.pallas_call(
        kernel,
        out_shape=jax.ShapeDtypeStruct((B, N, C), x.dtype),
        grid=(B,),
        in_specs=[
            pl.BlockSpec((1, N, C), lambda b: (b, 0, 0)),         # x: one batch element per step
            full_spec((1, C)), full_spec((1, C)),                 # norm1 gamma/beta
            full_spec((num_heads, C, hd)),                        # q weights (scale folded)
            full_spec((num_heads, C, hd)),                        # k weights
            full_spec((num_heads, C, hd)),                        # v weights
            full_spec((num_heads, hd, C)), full_spec((1, C)),     # proj weight (per-head rows) / bias
            full_spec((1, C)), full_spec((1, C)),                 # norm2 gamma/beta
            full_spec((C, H)), full_spec((1, H)),                 # fc1 weight / bias
            full_spec((H, C)), full_spec((1, C)),                 # fc2 weight / bias
        ],
        out_specs=pl.BlockSpec((1, N, C), lambda b: (b, 0, 0)),
        compiler_params=pltpu.CompilerParams(
            dimension_semantics=("parallel",),
            vmem_limit_bytes=48 * 1024 * 1024,
        ),
    )(x,
      params["n1_g"], params["n1_b"],
      wq, wk, wv,
      wproj, params["bproj"],
      params["n2_g"], params["n2_b"],
      w1, params["b1"],
      w2, params["b2"])


def _reference_block(x, p, num_heads):
    """Pure-JAX f32 reference with identical math (for a sanity check)."""
    B, N, C = x.shape
    hd = C // num_heads
    scale = hd ** -0.5

    def ln(v, g, b):
        mu = jnp.mean(v, -1, keepdims=True)
        var = jnp.mean((v - mu) ** 2, -1, keepdims=True)
        return (v - mu) / jnp.sqrt(var + _LN_EPS) * g + b

    h = ln(x, p["n1_g"], p["n1_b"])
    qkv = h @ p["wqkv"]                                            # (B, N, 3C)
    qkv = qkv.reshape(B, N, 3, num_heads, hd).transpose(2, 0, 3, 1, 4)
    q, k, v = qkv[0], qkv[1], qkv[2]                               # (B, heads, N, hd)
    attn = jnp.einsum("bhqd,bhkd->bhqk", q, k) * scale
    attn = jax.nn.softmax(attn, axis=-1)
    ctx = jnp.einsum("bhqk,bhkd->bhqd", attn, v).transpose(0, 2, 1, 3).reshape(B, N, C)
    x = x + ctx @ p["wproj"] + p["bproj"]

    h = ln(x, p["n2_g"], p["n2_b"])
    h = h @ p["w1"] + p["b1"]
    h = 0.5 * h * (1.0 + lax.erf(h * _INV_SQRT2))
    h = h @ p["w2"] + p["b2"]
    return x + h


if __name__ == "__main__":
    # Small, forward-consistent shapes: batch=2, tokens=8, dim=32, heads=4, mlp_ratio=4 -> hidden=128
    B, N, C = 2, 8, 32
    num_heads = 4
    H = int(C * 4.0)

    key = jax.random.PRNGKey(0)
    ks = jax.random.split(key, 8)

    params = {
        "n1_g": jnp.ones((1, C), jnp.float32),
        "n1_b": jnp.zeros((1, C), jnp.float32),
        "wqkv": (jax.random.normal(ks[0], (C, 3 * C), jnp.float32) * 0.02),
        "wproj": (jax.random.normal(ks[1], (C, C), jnp.float32) * 0.02),
        "bproj": (jax.random.normal(ks[2], (1, C), jnp.float32) * 0.02),
        "n2_g": jnp.ones((1, C), jnp.float32),
        "n2_b": jnp.zeros((1, C), jnp.float32),
        "w1": (jax.random.normal(ks[3], (C, H), jnp.float32) * 0.02),
        "b1": (jax.random.normal(ks[4], (1, H), jnp.float32) * 0.02),
        "w2": (jax.random.normal(ks[5], (H, C), jnp.float32) * 0.02),
        "b2": (jax.random.normal(ks[6], (1, C), jnp.float32) * 0.02),
    }

    x = jax.random.normal(ks[7], (B, N, C), jnp.float32)

    out = vit_block(x, params, num_heads)
    out = jax.block_until_ready(out)

    ref = _reference_block(x, params, num_heads)
    assert out.shape == (B, N, C)
    # Tolerance loosened vs. the f32 reference because MXU operands are bf16
    # (accumulation is still f32); residual path is exact f32.
    assert jnp.allclose(out, ref, rtol=1e-2, atol=1e-2), "mismatch vs. pure-JAX reference"

    print("KERNEL_OK")
</pallas_src>

<mosaic_0001>
module attributes {stable_mosaic.version = 11 : i64} {
  func.func @block_kernel(%arg0: i32, %arg1: memref<1x8x32xf32, #tpu.memory_space<vmem>>, %arg2: memref<1x32xf32, #tpu.memory_space<vmem>>, %arg3: memref<1x32xf32, #tpu.memory_space<vmem>>, %arg4: memref<4x32x8xbf16, #tpu.memory_space<vmem>>, %arg5: memref<4x32x8xbf16, #tpu.memory_space<vmem>>, %arg6: memref<4x32x8xbf16, #tpu.memory_space<vmem>>, %arg7: memref<4x8x32xbf16, #tpu.memory_space<vmem>>, %arg8: memref<1x32xf32, #tpu.memory_space<vmem>>, %arg9: memref<1x32xf32, #tpu.memory_space<vmem>>, %arg10: memref<1x32xf32, #tpu.memory_space<vmem>>, %arg11: memref<32x128xbf16, #tpu.memory_space<vmem>>, %arg12: memref<1x128xf32, #tpu.memory_space<vmem>>, %arg13: memref<128x32xbf16, #tpu.memory_space<vmem>>, %arg14: memref<1x32xf32, #tpu.memory_space<vmem>>, %arg15: memref<1x8x32xf32, #tpu.memory_space<vmem>>) attributes {dimension_semantics = [#tpu.dimension_semantics<parallel>], iteration_bounds = array<i64: 2>, scalar_prefetch = 0 : i64, scratch_operands = 0 : i64, tpu.core_type = #tpu.core_type<tc>, window_params = [{transform_indices = @transform_0, window_bounds = array<i64: 1, 8, 32>}, {pipeline_mode = #tpu.pipeline_mode<synchronous>, transform_indices = @transform_1, window_bounds = array<i64: 1, 32>}, {pipeline_mode = #tpu.pipeline_mode<synchronous>, transform_indices = @transform_2, window_bounds = array<i64: 1, 32>}, {pipeline_mode = #tpu.pipeline_mode<synchronous>, transform_indices = @transform_3, window_bounds = array<i64: 4, 32, 8>}, {pipeline_mode = #tpu.pipeline_mode<synchronous>, transform_indices = @transform_4, window_bounds = array<i64: 4, 32, 8>}, {pipeline_mode = #tpu.pipeline_mode<synchronous>, transform_indices = @transform_5, window_bounds = array<i64: 4, 32, 8>}, {pipeline_mode = #tpu.pipeline_mode<synchronous>, transform_indices = @transform_6, window_bounds = array<i64: 4, 8, 32>}, {pipeline_mode = #tpu.pipeline_mode<synchronous>, transform_indices = @transform_7, window_bounds = array<i64: 1, 32>}, {pipeline_mode = #tpu.pipeline_mode<synchronous>, transform_indices = @transform_8, window_bounds = array<i64: 1, 32>}, {pipeline_mode = #tpu.pipeline_mode<synchronous>, transform_indices = @transform_9, window_bounds = array<i64: 1, 32>}, {pipeline_mode = #tpu.pipeline_mode<synchronous>, transform_indices = @transform_10, window_bounds = array<i64: 32, 128>}, {pipeline_mode = #tpu.pipeline_mode<synchronous>, transform_indices = @transform_11, window_bounds = array<i64: 1, 128>}, {pipeline_mode = #tpu.pipeline_mode<synchronous>, transform_indices = @transform_12, window_bounds = array<i64: 128, 32>}, {pipeline_mode = #tpu.pipeline_mode<synchronous>, transform_indices = @transform_13, window_bounds = array<i64: 1, 32>}, {transform_indices = @transform_14, window_bounds = array<i64: 1, 8, 32>}]} {
    %c0 = arith.constant 0 : index
    %c0_0 = arith.constant 0 : index
    %c0_1 = arith.constant 0 : index
    %0 = vector.load %arg1[%c0, %c0_0, %c0_1] : memref<1x8x32xf32, #tpu.memory_space<vmem>>, vector<1x8x32xf32>
    %1 = vector.shape_cast %0 : vector<1x8x32xf32> to vector<8x32xf32>
    %c0_2 = arith.constant 0 : index
    %c0_3 = arith.constant 0 : index
    %2 = vector.load %arg2[%c0_2, %c0_3] : memref<1x32xf32, #tpu.memory_space<vmem>>, vector<1x32xf32>
    %c0_4 = arith.constant 0 : index
    %c0_5 = arith.constant 0 : index
    %3 = vector.load %arg3[%c0_4, %c0_5] : memref<1x32xf32, #tpu.memory_space<vmem>>, vector<1x32xf32>
    %cst = arith.constant dense<0.000000e+00> : vector<8xf32>
    %4 = vector.multi_reduction <add>, %1, %cst [1] : vector<8x32xf32> to vector<8xf32>
    %5 = vector.shape_cast %4 : vector<8xf32> to vector<8x1xf32>
    %cst_6 = arith.constant 3.200000e+01 : f32
    %6 = vector.broadcast %cst_6 : f32 to vector<8x1xf32>
    %7 = arith.divf %5, %6 : vector<8x1xf32>
    %8 = vector.broadcast %7 : vector<8x1xf32> to vector<8x32xf32>
    %9 = arith.subf %1, %8 : vector<8x32xf32>
    %10 = arith.mulf %9, %9 : vector<8x32xf32>
    %cst_7 = arith.constant dense<0.000000e+00> : vector<8xf32>
    %11 = vector.multi_reduction <add>, %10, %cst_7 [1] : vector<8x32xf32> to vector<8xf32>
    %12 = vector.shape_cast %11 : vector<8xf32> to vector<8x1xf32>
    %cst_8 = arith.constant 3.200000e+01 : f32
    %13 = vector.broadcast %cst_8 : f32 to vector<8x1xf32>
    %14 = arith.divf %12, %13 : vector<8x1xf32>
    %15 = vector.broadcast %7 : vector<8x1xf32> to vector<8x32xf32>
    %16 = arith.subf %1, %15 : vector<8x32xf32>
    %cst_9 = arith.constant 9.99999974E-6 : f32
    %17 = vector.broadcast %cst_9 : f32 to vector<8x1xf32>
    %18 = arith.addf %14, %17 : vector<8x1xf32>
    %19 = math.rsqrt %18 : vector<8x1xf32>
    %20 = vector.broadcast %19 : vector<8x1xf32> to vector<8x32xf32>
    %21 = arith.mulf %16, %20 : vector<8x32xf32>
    %22 = vector.broadcast %2 : vector<1x32xf32> to vector<8x32xf32>
    %23 = arith.mulf %21, %22 : vector<8x32xf32>
    %24 = vector.broadcast %3 : vector<1x32xf32> to vector<8x32xf32>
    %25 = arith.addf %23, %24 : vector<8x32xf32>
    %26 = arith.truncf %25 : vector<8x32xf32> to vector<8x32xbf16>
    %cst_10 = arith.constant 0.000000e+00 : f32
    %27 = vector.broadcast %cst_10 : f32 to vector<8x32xf32>
    %c0_11 = arith.constant 0 : index
    %c0_12 = arith.constant 0 : index
    %c0_13 = arith.constant 0 : index
    %28 = vector.load %arg4[%c0_11, %c0_12, %c0_13] : memref<4x32x8xbf16, #tpu.memory_space<vmem>>, vector<1x32x8xbf16>
    %29 = vector.shape_cast %28 : vector<1x32x8xbf16> to vector<32x8xbf16>
    %cst_14 = arith.constant dense<0.000000e+00> : vector<8x8xf32>
    %30 = tpu.matmul %26, %29, %cst_14 {dimension_numbers = #tpu.dot_dimension_numbers<[1], [0], [0], [1], [0, 0, 1, 1], [], []>} : vector<8x32xbf16>, vector<32x8xbf16>, vector<8x8xf32> -> vector<8x8xf32>
    %c0_15 = arith.constant 0 : index
    %c0_16 = arith.constant 0 : index
    %c0_17 = arith.constant 0 : index
    %31 = vector.load %arg5[%c0_15, %c0_16, %c0_17] : memref<4x32x8xbf16, #tpu.memory_space<vmem>>, vector<1x32x8xbf16>
    %32 = vector.shape_cast %31 : vector<1x32x8xbf16> to vector<32x8xbf16>
    %cst_18 = arith.constant dense<0.000000e+00> : vector<8x8xf32>
    %33 = tpu.matmul %26, %32, %cst_18 {dimension_numbers = #tpu.dot_dimension_numbers<[1], [0], [0], [1], [0, 0, 1, 1], [], []>} : vector<8x32xbf16>, vector<32x8xbf16>, vector<8x8xf32> -> vector<8x8xf32>
    %c0_19 = arith.constant 0 : index
    %c0_20 = arith.constant 0 : index
    %c0_21 = arith.constant 0 : index
    %34 = vector.load %arg6[%c0_19, %c0_20, %c0_21] : memref<4x32x8xbf16, #tpu.memory_space<vmem>>, vector<1x32x8xbf16>
    %35 = vector.shape_cast %34 : vector<1x32x8xbf16> to vector<32x8xbf16>
    %cst_22 = arith.constant dense<0.000000e+00> : vector<8x8xf32>
    %36 = tpu.matmul %26, %35, %cst_22 {dimension_numbers = #tpu.dot_dimension_numbers<[1], [0], [0], [1], [0, 0, 1, 1], [], []>} : vector<8x32xbf16>, vector<32x8xbf16>, vector<8x8xf32> -> vector<8x8xf32>
    %37 = arith.truncf %30 : vector<8x8xf32> to vector<8x8xbf16>
    %38 = arith.truncf %33 : vector<8x8xf32> to vector<8x8xbf16>
    %cst_23 = arith.constant dense<0.000000e+00> : vector<8x8xf32>
    %39 = tpu.matmul %37, %38, %cst_23 {dimension_numbers = #tpu.dot_dimension_numbers<[1], [1], [0], [0], [0, 0, 1, 0], [], []>} : vector<8x8xbf16>, vector<8x8xbf16>, vector<8x8xf32> -> vector<8x8xf32>
    %cst_24 = arith.constant dense<0xFF800000> : vector<8xf32>
    %40 = vector.multi_reduction <maximumf>, %39, %cst_24 [1] : vector<8x8xf32> to vector<8xf32>
    %41 = vector.shape_cast %40 : vector<8xf32> to vector<8x1xf32>
    %42 = vector.broadcast %41 : vector<8x1xf32> to vector<8x8xf32>
    %43 = arith.subf %39, %42 : vector<8x8xf32>
    %44 = math.exp %43 : vector<8x8xf32>
    %cst_25 = arith.constant dense<0.000000e+00> : vector<8xf32>
    %45 = vector.multi_reduction <add>, %44, %cst_25 [1] : vector<8x8xf32> to vector<8xf32>
    %46 = vector.shape_cast %45 : vector<8xf32> to vector<8x1xf32>
    %47 = tpu.reciprocal %46 {approx = true} : vector<8x1xf32> -> vector<8x1xf32>
    %48 = vector.broadcast %47 : vector<8x1xf32> to vector<8x8xf32>
    %49 = arith.mulf %44, %48 : vector<8x8xf32>
    %50 = arith.truncf %49 : vector<8x8xf32> to vector<8x8xbf16>
    %51 = arith.truncf %36 : vector<8x8xf32> to vector<8x8xbf16>
    %cst_26 = arith.constant dense<0.000000e+00> : vector<8x8xf32>
    %52 = tpu.matmul %50, %51, %cst_26 {dimension_numbers = #tpu.dot_dimension_numbers<[1], [0], [0], [1], [0, 0, 1, 1], [], []>} : vector<8x8xbf16>, vector<8x8xbf16>, vector<8x8xf32> -> vector<8x8xf32>
    %53 = arith.truncf %52 : vector<8x8xf32> to vector<8x8xbf16>
    %c0_27 = arith.constant 0 : index
    %c0_28 = arith.constant 0 : index
    %c0_29 = arith.constant 0 : index
    %54 = vector.load %arg7[%c0_27, %c0_28, %c0_29] : memref<4x8x32xbf16, #tpu.memory_space<vmem>>, vector<1x8x32xbf16>
    %55 = vector.shape_cast %54 : vector<1x8x32xbf16> to vector<8x32xbf16>
    %cst_30 = arith.constant dense<0.000000e+00> : vector<8x32xf32>
    %56 = tpu.matmul %53, %55, %cst_30 {dimension_numbers = #tpu.dot_dimension_numbers<[1], [0], [0], [1], [0, 0, 1, 1], [], []>} : vector<8x8xbf16>, vector<8x32xbf16>, vector<8x32xf32> -> vector<8x32xf32>
    %57 = arith.addf %27, %56 : vector<8x32xf32>
    %c1 = arith.constant 1 : index
    %c0_31 = arith.constant 0 : index
    %c0_32 = arith.constant 0 : index
    %58 = vector.load %arg4[%c1, %c0_31, %c0_32] : memref<4x32x8xbf16, #tpu.memory_space<vmem>>, vector<1x32x8xbf16>
    %59 = vector.shape_cast %58 : vector<1x32x8xbf16> to vector<32x8xbf16>
    %cst_33 = arith.constant dense<0.000000e+00> : vector<8x8xf32>
    %60 = tpu.matmul %26, %59, %cst_33 {dimension_numbers = #tpu.dot_dimension_numbers<[1], [0], [0], [1], [0, 0, 1, 1], [], []>} : vector<8x32xbf16>, vector<32x8xbf16>, vector<8x8xf32> -> vector<8x8xf32>
    %c1_34 = arith.constant 1 : index
    %c0_35 = arith.constant 0 : index
    %c0_36 = arith.constant 0 : index
    %61 = vector.load %arg5[%c1_34, %c0_35, %c0_36] : memref<4x32x8xbf16, #tpu.memory_space<vmem>>, vector<1x32x8xbf16>
    %62 = vector.shape_cast %61 : vector<1x32x8xbf16> to vector<32x8xbf16>
    %cst_37 = arith.constant dense<0.000000e+00> : vector<8x8xf32>
    %63 = tpu.matmul %26, %62, %cst_37 {dimension_numbers = #tpu.dot_dimension_numbers<[1], [0], [0], [1], [0, 0, 1, 1], [], []>} : vector<8x32xbf16>, vector<32x8xbf16>, vector<8x8xf32> -> vector<8x8xf32>
    %c1_38 = arith.constant 1 : index
    %c0_39 = arith.constant 0 : index
    %c0_40 = arith.constant 0 : index
    %64 = vector.load %arg6[%c1_38, %c0_39, %c0_40] : memref<4x32x8xbf16, #tpu.memory_space<vmem>>, vector<1x32x8xbf16>
    %65 = vector.shape_cast %64 : vector<1x32x8xbf16> to vector<32x8xbf16>
    %cst_41 = arith.constant dense<0.000000e+00> : vector<8x8xf32>
    %66 = tpu.matmul %26, %65, %cst_41 {dimension_numbers = #tpu.dot_dimension_numbers<[1], [0], [0], [1], [0, 0, 1, 1], [], []>} : vector<8x32xbf16>, vector<32x8xbf16>, vector<8x8xf32> -> vector<8x8xf32>
    %67 = arith.truncf %60 : vector<8x8xf32> to vector<8x8xbf16>
    %68 = arith.truncf %63 : vector<8x8xf32> to vector<8x8xbf16>
    %cst_42 = arith.constant dense<0.000000e+00> : vector<8x8xf32>
    %69 = tpu.matmul %67, %68, %cst_42 {dimension_numbers = #tpu.dot_dimension_numbers<[1], [1], [0], [0], [0, 0, 1, 0], [], []>} : vector<8x8xbf16>, vector<8x8xbf16>, vector<8x8xf32> -> vector<8x8xf32>
    %cst_43 = arith.constant dense<0xFF800000> : vector<8xf32>
    %70 = vector.multi_reduction <maximumf>, %69, %cst_43 [1] : vector<8x8xf32> to vector<8xf32>
    %71 = vector.shape_cast %70 : vector<8xf32> to vector<8x1xf32>
    %72 = vector.broadcast %71 : vector<8x1xf32> to vector<8x8xf32>
    %73 = arith.subf %69, %72 : vector<8x8xf32>
    %74 = math.exp %73 : vector<8x8xf32>
    %cst_44 = arith.constant dense<0.000000e+00> : vector<8xf32>
    %75 = vector.multi_reduction <add>, %74, %cst_44 [1] : vector<8x8xf32> to vector<8xf32>
    %76 = vector.shape_cast %75 : vector<8xf32> to vector<8x1xf32>
    %77 = tpu.reciprocal %76 {approx = true} : vector<8x1xf32> -> vector<8x1xf32>
    %78 = vector.broadcast %77 : vector<8x1xf32> to vector<8x8xf32>
    %79 = arith.mulf %74, %78 : vector<8x8xf32>
    %80 = arith.truncf %79 : vector<8x8xf32> to vector<8x8xbf16>
    %81 = arith.truncf %66 : vector<8x8xf32> to vector<8x8xbf16>
    %cst_45 = arith.constant dense<0.000000e+00> : vector<8x8xf32>
    %82 = tpu.matmul %80, %81, %cst_45 {dimension_numbers = #tpu.dot_dimension_numbers<[1], [0], [0], [1], [0, 0, 1, 1], [], []>} : vector<8x8xbf16>, vector<8x8xbf16>, vector<8x8xf32> -> vector<8x8xf32>
    %83 = arith.truncf %82 : vector<8x8xf32> to vector<8x8xbf16>
    %c1_46 = arith.constant 1 : index
    %c0_47 = arith.constant 0 : index
    %c0_48 = arith.constant 0 : index
    %84 = vector.load %arg7[%c1_46, %c0_47, %c0_48] : memref<4x8x32xbf16, #tpu.memory_space<vmem>>, vector<1x8x32xbf16>
    %85 = vector.shape_cast %84 : vector<1x8x32xbf16> to vector<8x32xbf16>
    %cst_49 = arith.constant dense<0.000000e+00> : vector<8x32xf32>
    %86 = tpu.matmul %83, %85, %cst_49 {dimension_numbers = #tpu.dot_dimension_numbers<[1], [0], [0], [1], [0, 0, 1, 1], [], []>} : vector<8x8xbf16>, vector<8x32xbf16>, vector<8x32xf32> -> vector<8x32xf32>
    %87 = arith.addf %57, %86 : vector<8x32xf32>
    %c2 = arith.constant 2 : index
    %c0_50 = arith.constant 0 : index
    %c0_51 = arith.constant 0 : index
    %88 = vector.load %arg4[%c2, %c0_50, %c0_51] : memref<4x32x8xbf16, #tpu.memory_space<vmem>>, vector<1x32x8xbf16>
    %89 = vector.shape_cast %88 : vector<1x32x8xbf16> to vector<32x8xbf16>
    %cst_52 = arith.constant dense<0.000000e+00> : vector<8x8xf32>
    %90 = tpu.matmul %26, %89, %cst_52 {dimension_numbers = #tpu.dot_dimension_numbers<[1], [0], [0], [1], [0, 0, 1, 1], [], []>} : vector<8x32xbf16>, vector<32x8xbf16>, vector<8x8xf32> -> vector<8x8xf32>
    %c2_53 = arith.constant 2 : index
    %c0_54 = arith.constant 0 : index
    %c0_55 = arith.constant 0 : index
    %91 = vector.load %arg5[%c2_53, %c0_54, %c0_55] : memref<4x32x8xbf16, #tpu.memory_space<vmem>>, vector<1x32x8xbf16>
    %92 = vector.shape_cast %91 : vector<1x32x8xbf16> to vector<32x8xbf16>
    %cst_56 = arith.constant dense<0.000000e+00> : vector<8x8xf32>
    %93 = tpu.matmul %26, %92, %cst_56 {dimension_numbers = #tpu.dot_dimension_numbers<[1], [0], [0], [1], [0, 0, 1, 1], [], []>} : vector<8x32xbf16>, vector<32x8xbf16>, vector<8x8xf32> -> vector<8x8xf32>
    %c2_57 = arith.constant 2 : index
    %c0_58 = arith.constant 0 : index
    %c0_59 = arith.constant 0 : index
    %94 = vector.load %arg6[%c2_57, %c0_58, %c0_59] : memref<4x32x8xbf16, #tpu.memory_space<vmem>>, vector<1x32x8xbf16>
    %95 = vector.shape_cast %94 : vector<1x32x8xbf16> to vector<32x8xbf16>
    %cst_60 = arith.constant dense<0.000000e+00> : vector<8x8xf32>
    %96 = tpu.matmul %26, %95, %cst_60 {dimension_numbers = #tpu.dot_dimension_numbers<[1], [0], [0], [1], [0, 0, 1, 1], [], []>} : vector<8x32xbf16>, vector<32x8xbf16>, vector<8x8xf32> -> vector<8x8xf32>
    %97 = arith.truncf %90 : vector<8x8xf32> to vector<8x8xbf16>
    %98 = arith.truncf %93 : vector<8x8xf32> to vector<8x8xbf16>
    %cst_61 = arith.constant dense<0.000000e+00> : vector<8x8xf32>
    %99 = tpu.matmul %97, %98, %cst_61 {dimension_numbers = #tpu.dot_dimension_numbers<[1], [1], [0], [0], [0, 0, 1, 0], [], []>} : vector<8x8xbf16>, vector<8x8xbf16>, vector<8x8xf32> -> vector<8x8xf32>
    %cst_62 = arith.constant dense<0xFF800000> : vector<8xf32>
    %100 = vector.multi_reduction <maximumf>, %99, %cst_62 [1] : vector<8x8xf32> to vector<8xf32>
    %101 = vector.shape_cast %100 : vector<8xf32> to vector<8x1xf32>
    %102 = vector.broadcast %101 : vector<8x1xf32> to vector<8x8xf32>
    %103 = arith.subf %99, %102 : vector<8x8xf32>
    %104 = math.exp %103 : vector<8x8xf32>
    %cst_63 = arith.constant dense<0.000000e+00> : vector<8xf32>
    %105 = vector.multi_reduction <add>, %104, %cst_63 [1] : vector<8x8xf32> to vector<8xf32>
    %106 = vector.shape_cast %105 : vector<8xf32> to vector<8x1xf32>
    %107 = tpu.reciprocal %106 {approx = true} : vector<8x1xf32> -> vector<8x1xf32>
    %108 = vector.broadcast %107 : vector<8x1xf32> to vector<8x8xf32>
    %109 = arith.mulf %104, %108 : vector<8x8xf32>
    %110 = arith.truncf %109 : vector<8x8xf32> to vector<8x8xbf16>
    %111 = arith.truncf %96 : vector<8x8xf32> to vector<8x8xbf16>
    %cst_64 = arith.constant dense<0.000000e+00> : vector<8x8xf32>
    %112 = tpu.matmul %110, %111, %cst_64 {dimension_numbers = #tpu.dot_dimension_numbers<[1], [0], [0], [1], [0, 0, 1, 1], [], []>} : vector<8x8xbf16>, vector<8x8xbf16>, vector<8x8xf32> -> vector<8x8xf32>
    %113 = arith.truncf %112 : vector<8x8xf32> to vector<8x8xbf16>
    %c2_65 = arith.constant 2 : index
    %c0_66 = arith.constant 0 : index
    %c0_67 = arith.constant 0 : index
    %114 = vector.load %arg7[%c2_65, %c0_66, %c0_67] : memref<4x8x32xbf16, #tpu.memory_space<vmem>>, vector<1x8x32xbf16>
    %115 = vector.shape_cast %114 : vector<1x8x32xbf16> to vector<8x32xbf16>
    %cst_68 = arith.constant dense<0.000000e+00> : vector<8x32xf32>
    %116 = tpu.matmul %113, %115, %cst_68 {dimension_numbers = #tpu.dot_dimension_numbers<[1], [0], [0], [1], [0, 0, 1, 1], [], []>} : vector<8x8xbf16>, vector<8x32xbf16>, vector<8x32xf32> -> vector<8x32xf32>
    %117 = arith.addf %87, %116 : vector<8x32xf32>
    %c3 = arith.constant 3 : index
    %c0_69 = arith.constant 0 : index
    %c0_70 = arith.constant 0 : index
    %118 = vector.load %arg4[%c3, %c0_69, %c0_70] : memref<4x32x8xbf16, #tpu.memory_space<vmem>>, vector<1x32x8xbf16>
    %119 = vector.shape_cast %118 : vector<1x32x8xbf16> to vector<32x8xbf16>
    %cst_71 = arith.constant dense<0.000000e+00> : vector<8x8xf32>
    %120 = tpu.matmul %26, %119, %cst_71 {dimension_numbers = #tpu.dot_dimension_numbers<[1], [0], [0], [1], [0, 0, 1, 1], [], []>} : vector<8x32xbf16>, vector<32x8xbf16>, vector<8x8xf32> -> vector<8x8xf32>
    %c3_72 = arith.constant 3 : index
    %c0_73 = arith.constant 0 : index
    %c0_74 = arith.constant 0 : index
    %121 = vector.load %arg5[%c3_72, %c0_73, %c0_74] : memref<4x32x8xbf16, #tpu.memory_space<vmem>>, vector<1x32x8xbf16>
    %122 = vector.shape_cast %121 : vector<1x32x8xbf16> to vector<32x8xbf16>
    %cst_75 = arith.constant dense<0.000000e+00> : vector<8x8xf32>
    %123 = tpu.matmul %26, %122, %cst_75 {dimension_numbers = #tpu.dot_dimension_numbers<[1], [0], [0], [1], [0, 0, 1, 1], [], []>} : vector<8x32xbf16>, vector<32x8xbf16>, vector<8x8xf32> -> vector<8x8xf32>
    %c3_76 = arith.constant 3 : index
    %c0_77 = arith.constant 0 : index
    %c0_78 = arith.constant 0 : index
    %124 = vector.load %arg6[%c3_76, %c0_77, %c0_78] : memref<4x32x8xbf16, #tpu.memory_space<vmem>>, vector<1x32x8xbf16>
    %125 = vector.shape_cast %124 : vector<1x32x8xbf16> to vector<32x8xbf16>
    %cst_79 = arith.constant dense<0.000000e+00> : vector<8x8xf32>
    %126 = tpu.matmul %26, %125, %cst_79 {dimension_numbers = #tpu.dot_dimension_numbers<[1], [0], [0], [1], [0, 0, 1, 1], [], []>} : vector<8x32xbf16>, vector<32x8xbf16>, vector<8x8xf32> -> vector<8x8xf32>
    %127 = arith.truncf %120 : vector<8x8xf32> to vector<8x8xbf16>
    %128 = arith.truncf %123 : vector<8x8xf32> to vector<8x8xbf16>
    %cst_80 = arith.constant dense<0.000000e+00> : vector<8x8xf32>
    %129 = tpu.matmul %127, %128, %cst_80 {dimension_numbers = #tpu.dot_dimension_numbers<[1], [1], [0], [0], [0, 0, 1, 0], [], []>} : vector<8x8xbf16>, vector<8x8xbf16>, vector<8x8xf32> -> vector<8x8xf32>
    %cst_81 = arith.constant dense<0xFF800000> : vector<8xf32>
    %130 = vector.multi_reduction <maximumf>, %129, %cst_81 [1] : vector<8x8xf32> to vector<8xf32>
    %131 = vector.shape_cast %130 : vector<8xf32> to vector<8x1xf32>
    %132 = vector.broadcast %131 : vector<8x1xf32> to vector<8x8xf32>
    %133 = arith.subf %129, %132 : vector<8x8xf32>
    %134 = math.exp %133 : vector<8x8xf32>
    %cst_82 = arith.constant dense<0.000000e+00> : vector<8xf32>
    %135 = vector.multi_reduction <add>, %134, %cst_82 [1] : vector<8x8xf32> to vector<8xf32>
    %136 = vector.shape_cast %135 : vector<8xf32> to vector<8x1xf32>
    %137 = tpu.reciprocal %136 {approx = true} : vector<8x1xf32> -> vector<8x1xf32>
    %138 = vector.broadcast %137 : vector<8x1xf32> to vector<8x8xf32>
    %139 = arith.mulf %134, %138 : vector<8x8xf32>
    %140 = arith.truncf %139 : vector<8x8xf32> to vector<8x8xbf16>
    %141 = arith.truncf %126 : vector<8x8xf32> to vector<8x8xbf16>
    %cst_83 = arith.constant dense<0.000000e+00> : vector<8x8xf32>
    %142 = tpu.matmul %140, %141, %cst_83 {dimension_numbers = #tpu.dot_dimension_numbers<[1], [0], [0], [1], [0, 0, 1, 1], [], []>} : vector<8x8xbf16>, vector<8x8xbf16>, vector<8x8xf32> -> vector<8x8xf32>
    %143 = arith.truncf %142 : vector<8x8xf32> to vector<8x8xbf16>
    %c3_84 = arith.constant 3 : index
    %c0_85 = arith.constant 0 : index
    %c0_86 = arith.constant 0 : index
    %144 = vector.load %arg7[%c3_84, %c0_85, %c0_86] : memref<4x8x32xbf16, #tpu.memory_space<vmem>>, vector<1x8x32xbf16>
    %145 = vector.shape_cast %144 : vector<1x8x32xbf16> to vector<8x32xbf16>
    %cst_87 = arith.constant dense<0.000000e+00> : vector<8x32xf32>
    %146 = tpu.matmul %143, %145, %cst_87 {dimension_numbers = #tpu.dot_dimension_numbers<[1], [0], [0], [1], [0, 0, 1, 1], [], []>} : vector<8x8xbf16>, vector<8x32xbf16>, vector<8x32xf32> -> vector<8x32xf32>
    %147 = arith.addf %117, %146 : vector<8x32xf32>
    %148 = arith.addf %1, %147 : vector<8x32xf32>
    %c0_88 = arith.constant 0 : index
    %c0_89 = arith.constant 0 : index
    %149 = vector.load %arg8[%c0_88, %c0_89] : memref<1x32xf32, #tpu.memory_space<vmem>>, vector<1x32xf32>
    %150 = vector.broadcast %149 : vector<1x32xf32> to vector<8x32xf32>
    %151 = arith.addf %148, %150 : vector<8x32xf32>
    %c0_90 = arith.constant 0 : index
    %c0_91 = arith.constant 0 : index
    %152 = vector.load %arg9[%c0_90, %c0_91] : memref<1x32xf32, #tpu.memory_space<vmem>>, vector<1x32xf32>
    %c0_92 = arith.constant 0 : index
    %c0_93 = arith.constant 0 : index
    %153 = vector.load %arg10[%c0_92, %c0_93] : memref<1x32xf32, #tpu.memory_space<vmem>>, vector<1x32xf32>
    %cst_94 = arith.constant dense<0.000000e+00> : vector<8xf32>
    %154 = vector.multi_reduction <add>, %151, %cst_94 [1] : vector<8x32xf32> to vector<8xf32>
    %155 = vector.shape_cast %154 : vector<8xf32> to vector<8x1xf32>
    %cst_95 = arith.constant 3.200000e+01 : f32
    %156 = vector.broadcast %cst_95 : f32 to vector<8x1xf32>
    %157 = arith.divf %155, %156 : vector<8x1xf32>
    %158 = vector.broadcast %157 : vector<8x1xf32> to vector<8x32xf32>
    %159 = arith.subf %151, %158 : vector<8x32xf32>
    %160 = arith.mulf %159, %159 : vector<8x32xf32>
    %cst_96 = arith.constant dense<0.000000e+00> : vector<8xf32>
    %161 = vector.multi_reduction <add>, %160, %cst_96 [1] : vector<8x32xf32> to vector<8xf32>
    %162 = vector.shape_cast %161 : vector<8xf32> to vector<8x1xf32>
    %cst_97 = arith.constant 3.200000e+01 : f32
    %163 = vector.broadcast %cst_97 : f32 to vector<8x1xf32>
    %164 = arith.divf %162, %163 : vector<8x1xf32>
    %165 = vector.broadcast %157 : vector<8x1xf32> to vector<8x32xf32>
    %166 = arith.subf %151, %165 : vector<8x32xf32>
    %cst_98 = arith.constant 9.99999974E-6 : f32
    %167 = vector.broadcast %cst_98 : f32 to vector<8x1xf32>
    %168 = arith.addf %164, %167 : vector<8x1xf32>
    %169 = math.rsqrt %168 : vector<8x1xf32>
    %170 = vector.broadcast %169 : vector<8x1xf32> to vector<8x32xf32>
    %171 = arith.mulf %166, %170 : vector<8x32xf32>
    %172 = vector.broadcast %152 : vector<1x32xf32> to vector<8x32xf32>
    %173 = arith.mulf %171, %172 : vector<8x32xf32>
    %174 = vector.broadcast %153 : vector<1x32xf32> to vector<8x32xf32>
    %175 = arith.addf %173, %174 : vector<8x32xf32>
    %176 = arith.truncf %175 : vector<8x32xf32> to vector<8x32xbf16>
    %c0_99 = arith.constant 0 : index
    %c0_100 = arith.constant 0 : index
    %177 = vector.load %arg11[%c0_99, %c0_100] : memref<32x128xbf16, #tpu.memory_space<vmem>>, vector<32x128xbf16>
    %cst_101 = arith.constant dense<0.000000e+00> : vector<8x128xf32>
    %178 = tpu.matmul %176, %177, %cst_101 {dimension_numbers = #tpu.dot_dimension_numbers<[1], [0], [0], [1], [0, 0, 1, 1], [], []>} : vector<8x32xbf16>, vector<32x128xbf16>, vector<8x128xf32> -> vector<8x128xf32>
    %c0_102 = arith.constant 0 : index
    %c0_103 = arith.constant 0 : index
    %179 = vector.load %arg12[%c0_102, %c0_103] : memref<1x128xf32, #tpu.memory_space<vmem>>, vector<1x128xf32>
    %180 = vector.broadcast %179 : vector<1x128xf32> to vector<8x128xf32>
    %181 = arith.addf %178, %180 : vector<8x128xf32>
    %cst_104 = arith.constant 5.000000e-01 : f32
    %182 = vector.broadcast %cst_104 : f32 to vector<8x128xf32>
    %183 = arith.mulf %182, %181 : vector<8x128xf32>
    %cst_105 = arith.constant 0.707106769 : f32
    %184 = vector.broadcast %cst_105 : f32 to vector<8x128xf32>
    %185 = arith.mulf %181, %184 : vector<8x128xf32>
    %186 = math.erf %185 : vector<8x128xf32>
    %cst_106 = arith.constant 1.000000e+00 : f32
    %187 = vector.broadcast %cst_106 : f32 to vector<8x128xf32>
    %188 = arith.addf %187, %186 : vector<8x128xf32>
    %189 = arith.mulf %183, %188 : vector<8x128xf32>
    %190 = arith.truncf %189 : vector<8x128xf32> to vector<8x128xbf16>
    %c0_107 = arith.constant 0 : index
    %c0_108 = arith.constant 0 : index
    %191 = vector.load %arg13[%c0_107, %c0_108] : memref<128x32xbf16, #tpu.memory_space<vmem>>, vector<128x32xbf16>
    %cst_109 = arith.constant dense<0.000000e+00> : vector<8x32xf32>
    %192 = tpu.matmul %190, %191, %cst_109 {dimension_numbers = #tpu.dot_dimension_numbers<[1], [0], [0], [1], [0, 0, 1, 1], [], []>} : vector<8x128xbf16>, vector<128x32xbf16>, vector<8x32xf32> -> vector<8x32xf32>
    %c0_110 = arith.constant 0 : index
    %c0_111 = arith.constant 0 : index
    %193 = vector.load %arg14[%c0_110, %c0_111] : memref<1x32xf32, #tpu.memory_space<vmem>>, vector<1x32xf32>
    %194 = vector.broadcast %193 : vector<1x32xf32> to vector<8x32xf32>
    %195 = arith.addf %192, %194 : vector<8x32xf32>
    %196 = arith.addf %151, %195 : vector<8x32xf32>
    %c0_112 = arith.constant 0 : index
    %c0_113 = arith.constant 0 : index
    %c0_114 = arith.constant 0 : index
    %197 = vector.load %arg15[%c0_112, %c0_113, %c0_114] : memref<1x8x32xf32, #tpu.memory_space<vmem>>, vector<1x8x32xf32>
    %198 = vector.shape_cast %197 : vector<1x8x32xf32> to vector<8x32xf32>
    %199 = vector.shape_cast %196 : vector<8x32xf32> to vector<1x8x32xf32>
    tpu.vector_store %arg15[%c0_112, %c0_113, %c0_114], %199 {strides = array<i32>} : memref<1x8x32xf32, #tpu.memory_space<vmem>>, vector<1x8x32xf32>,
    return
  }
  func.func @transform_0(%arg0: i32) -> (i32, i32, i32) {
    %c0_i32 = arith.constant 0 : i32
    %c0_i32_0 = arith.constant 0 : i32
    %c0_i32_1 = arith.constant 0 : i32
    return %arg0, %c0_i32, %c0_i32_0 : i32, i32, i32
  }
  func.func @transform_1(%arg0: i32) -> (i32, i32) {
    %c0_i32 = arith.constant 0 : i32
    %c0_i32_0 = arith.constant 0 : i32
    %c0_i32_1 = arith.constant 0 : i32
    return %c0_i32, %c0_i32_0 : i32, i32
  }
  func.func @transform_2(%arg0: i32) -> (i32, i32) {
    %c0_i32 = arith.constant 0 : i32
    %c0_i32_0 = arith.constant 0 : i32
    %c0_i32_1 = arith.constant 0 : i32
    return %c0_i32, %c0_i32_0 : i32, i32
  }
  func.func @transform_3(%arg0: i32) -> (i32, i32, i32) {
    %c0_i32 = arith.constant 0 : i32
    %c0_i32_0 = arith.constant 0 : i32
    %c0_i32_1 = arith.constant 0 : i32
    %c0_i32_2 = arith.constant 0 : i32
    return %c0_i32, %c0_i32_0, %c0_i32_1 : i32, i32, i32
  }
  func.func @transform_4(%arg0: i32) -> (i32, i32, i32) {
    %c0_i32 = arith.constant 0 : i32
    %c0_i32_0 = arith.constant 0 : i32
    %c0_i32_1 = arith.constant 0 : i32
    %c0_i32_2 = arith.constant 0 : i32
    return %c0_i32, %c0_i32_0, %c0_i32_1 : i32, i32, i32
  }
  func.func @transform_5(%arg0: i32) -> (i32, i32, i32) {
    %c0_i32 = arith.constant 0 : i32
    %c0_i32_0 = arith.constant 0 : i32
    %c0_i32_1 = arith.constant 0 : i32
    %c0_i32_2 = arith.constant 0 : i32
    return %c0_i32, %c0_i32_0, %c0_i32_1 : i32, i32, i32
  }
  func.func @transform_6(%arg0: i32) -> (i32, i32, i32) {
    %c0_i32 = arith.constant 0 : i32
    %c0_i32_0 = arith.constant 0 : i32
    %c0_i32_1 = arith.constant 0 : i32
    %c0_i32_2 = arith.constant 0 : i32
    return %c0_i32, %c0_i32_0, %c0_i32_1 : i32, i32, i32
  }
  func.func @transform_7(%arg0: i32) -> (i32, i32) {
    %c0_i32 = arith.constant 0 : i32
    %c0_i32_0 = arith.constant 0 : i32
    %c0_i32_1 = arith.constant 0 : i32
    return %c0_i32, %c0_i32_0 : i32, i32
  }
  func.func @transform_8(%arg0: i32) -> (i32, i32) {
    %c0_i32 = arith.constant 0 : i32
    %c0_i32_0 = arith.constant 0 : i32
    %c0_i32_1 = arith.constant 0 : i32
    return %c0_i32, %c0_i32_0 : i32, i32
  }
  func.func @transform_9(%arg0: i32) -> (i32, i32) {
    %c0_i32 = arith.constant 0 : i32
    %c0_i32_0 = arith.constant 0 : i32
    %c0_i32_1 = arith.constant 0 : i32
    return %c0_i32, %c0_i32_0 : i32, i32
  }
  func.func @transform_10(%arg0: i32) -> (i32, i32) {
    %c0_i32 = arith.constant 0 : i32
    %c0_i32_0 = arith.constant 0 : i32
    %c0_i32_1 = arith.constant 0 : i32
    return %c0_i32, %c0_i32_0 : i32, i32
  }
  func.func @transform_11(%arg0: i32) -> (i32, i32) {
    %c0_i32 = arith.constant 0 : i32
    %c0_i32_0 = arith.constant 0 : i32
    %c0_i32_1 = arith.constant 0 : i32
    return %c0_i32, %c0_i32_0 : i32, i32
  }
  func.func @transform_12(%arg0: i32) -> (i32, i32) {
    %c0_i32 = arith.constant 0 : i32
    %c0_i32_0 = arith.constant 0 : i32
    %c0_i32_1 = arith.constant 0 : i32
    return %c0_i32, %c0_i32_0 : i32, i32
  }
  func.func @transform_13(%arg0: i32) -> (i32, i32) {
    %c0_i32 = arith.constant 0 : i32
    %c0_i32_0 = arith.constant 0 : i32
    %c0_i32_1 = arith.constant 0 : i32
    return %c0_i32, %c0_i32_0 : i32, i32
  }
  func.func @transform_14(%arg0: i32) -> (i32, i32, i32) {
    %c0_i32 = arith.constant 0 : i32
    %c0_i32_0 = arith.constant 0 : i32
    %c0_i32_1 = arith.constant 0 : i32
    return %arg0, %c0_i32, %c0_i32_0 : i32, i32, i32
  }
}

</mosaic_0001>

<bundles_post_ra>
// kernel: tpu_custom_call.1
= control target key start
LH: loop header
LB: loop body
LE: loop exit
PB: predicated region body
PF: predicated region fallthrough
CT: control target
= control target key end

     0   :  { %s3137_s0 = inlined_call_operand.vmem [shape: f32[2,8,32], index: 0, kind: input, shape index: {}]   ;;  %s3138_s1 = inlined_call_operand.vmem [shape: f32[1,32], index: 1, kind: input, shape index: {}]   ;;  %s3139_s2 = inlined_call_operand.vmem [shape: f32[1,32], index: 2, kind: input, shape index: {}]   ;;  %s3140_s3 = inlined_call_operand.vmem [shape: bf16[4,32,8], index: 3, kind: input, shape index: {}]   ;;  %s3141_s4 = inlined_call_operand.vmem [shape: bf16[4,32,8], index: 4, kind: input, shape index: {}]   ;;  %s3142_s5 = inlined_call_operand.vmem [shape: bf16[4,32,8], index: 5, kind: input, shape index: {}]   ;;  %s3143_s6 = inlined_call_operand.vmem [shape: bf16[4,8,32], index: 6, kind: input, shape index: {}]   ;;  %s3144_s7 = inlined_call_operand.vmem [shape: f32[1,32], index: 7, kind: input, shape index: {}]   ;;  %s3145_s8 = inlined_call_operand.vmem [shape: f32[1,32], index: 8, kind: input, shape index: {}]   ;;  %s3146_s9 = inlined_call_operand.vmem [shape: f32[1,32], index: 9, kind: input, shape index: {}]   ;;  %s3147_s10 = inlined_call_operand.vmem [shape: bf16[32,128], index: 10, kind: input, shape index: {}]   ;;  %s3148_s11 = inlined_call_operand.vmem [shape: f32[1,128], index: 11, kind: input, shape index: {}]   ;;  %s3149_s12 = inlined_call_operand.vmem [shape: bf16[128,32], index: 12, kind: input, shape index: {}]   ;;  %s3150_s13 = inlined_call_operand.vmem [shape: f32[1,32], index: 13, kind: input, shape index: {}]   ;;  %s3151_s14 = inlined_call_operand.hbm [shape: f32[2,8,32], index: 14, kind: output, shape index: {}]  }
   0x1   :  { %3152 = sst [smem:[#allocation5_spill]] %s3137_s0 }
   0x2   :  { %3153 = sst [smem:[#allocation6_spill]] %s3138_s1 }
   0x3   :  { %3154 = sst [smem:[#allocation7_spill]] %s3139_s2 }
   0x4   :  { %3155 = sst [smem:[#allocation8_spill]] %s3140_s3 }
   0x5   :  { %19 = vsyncpa [#allocation3], 0 }
   0x6   :  { %21 = vsyncpa [#allocation3 + $0x1], 0  ;;  %s2727_s29 = smov 0   ;;  %s2729_s30 = smov 0  }
   0x7   :  { %s2731_s15 = smov 0   ;;  %s2733_s16 = smov 0  }
   0x8 LB: > { %s2748_s17 = sadd.s32 4294967295, %s2647_s16   ;;  %s2105_s18 = sadd.s32 4294967294, %s2647_s16   ;;  %s2647_s16 = sphi %s2733_s16, %s3165_s16   ;;  %s2643_s15 = sphi %s2731_s15, %s3164_s15   ;;  %s2639_s30 = sphi %s2729_s30, %s3163_s30   ;;  %s2635_s29 = sphi %s2727_s29, %s3162_s29  }
   0x9   : > { %s2752_s19 = sadd.s32 1, %s2647_s16   ;;  %s333_s20 = sadd.s32 1, %s2643_s15 }
   0xa   : > { %s330_s21 = ssub.s32 %s2647_s16, %s2752_s19  ;;  %p343_p0 = scmp.ne.s32.totalorder %s2643_s15, %s2639_s30 }
   0xb   : > { %p331_p1 = scmp.eq.s32.totalorder %s330_s21, 0  ;;  %p344_p2 = scmp.eq.s32.totalorder %s2748_s17, 1 }
   0xc   : > { %p349_p3 = scmp.ne.s32.totalorder %s2639_s30, %s2635_s29  ;;  %p350_p4 = scmp.eq.s32.totalorder %s2105_s18, 1 }
   0xd   : > { %s2763_s22 = scalar_select %p331_p1, %s2643_s15, %s333_s20  }
   0xe   : > { %p2765_p5 = por %p344_p2, %p343_p0  ;;  %p2769_p6 = por %p350_p4, %p349_p3 }
   0xf   : > { %p2108_p7 = scmp.ge.s32.totalorder %s2647_s16, 1  ;;  %p414_p8 = scmp.lt.s32.totalorder %s2647_s16, 3 }
  0x11   : > { %p415_p9 = pnand %p2108_p7, %p414_p8 }
  0x12   : > { %p459_p10 = scmp.lt.s32.totalorder (!%p415_p9), %s2748_s17, 1  ;;  %vm467_vm0 = vcmask (!%p415_p9), 261120   ;;  %s3158_s0 = sld [smem:[#allocation5_spill]] (!%p415_p9)  ;;  %v2649_v8 = vmov (!%p415_p9), 0.0   ;;  %vm2650_vm1 = vmmov (!%p415_p9), 0   ;;  %v2531_v19 = vld [vmem:[%s3141_s4] sm:$0xff] (!%p415_p9)  }
  0x13   : > { %418 = sbr.rel (%p415_p9) target bundleno = 5008 (0x1390), region = 76  ;;  %s3159_s3 = sld [smem:[#allocation8_spill]] (!%p415_p9)  ;;  %2292 = vmatprep.subr.bf16.mxu0 (!%p415_p9), %v2649_v8  ;;  %2316 = vmatprep.subr.bf16.mxu1 (!%p415_p9), %v2649_v8  ;;  %v2532_v21 = vld [vmem:[%s3141_s4 + $0x8] sm:$0xff] (!%p415_p9)   ;;  %v2533_v22 = vld [vmem:[%s3142_s5] sm:$0xff] (!%p415_p9)   ;;  %vm670_vm2 = vcmask (!%p415_p9), 64512   ;;  %vm733_vm3 = vcmask (!%p415_p9), 1043456  }
  0x14   : > { %2296 = vmatprep.mubr.msk.bf16.mxu0 (!%p415_p9), %vm2650_vm1, %v2649_v8  ;;  %2318 = vmatprep.mubr.msk.bf16.mxu1 (!%p415_p9), %vm2650_vm1, %v2649_v8  ;;  %s3160_s1 = sld [smem:[#allocation6_spill]] (!%p415_p9)  ;;  %s3161_s2 = sld [smem:[#allocation7_spill]] (!%p415_p9)  ;;  %v2534_v23 = vld [vmem:[%s3142_s5 + $0x8] sm:$0xff] (!%p415_p9)   ;;  %v2537_v43 = vld [vmem:[%s3142_s5 + $0x10] sm:$0xff] (!%p415_p9)   ;;  %v2538_v44 = vld [vmem:[%s3142_s5 + $0x18] sm:$0xff] (!%p415_p9)  }
  0x15   : > { %s456_s21 = sand.u32 (!%p415_p9), 1, %s2639_s30   ;;  %s2217_s27 = sshll.u32 (!%p415_p9), %s2748_s17, 7 }
  0x19   : > { %v2529_v7 = vld [vmem:[%s3159_s3] sm:$0xff] (!%p415_p9)   ;;  %v2530_v9 = vld [vmem:[%s3159_s3 + $0x8] sm:$0xff] (!%p415_p9)   ;;  %v2535_v35 = vld [vmem:[%s3159_s3 + $0x10] sm:$0xff] (!%p415_p9)  }
  0x1a   : > { %s460_s25 = scalar_select %p459_p10, %s2748_s17, 1  ;;  %2293 = vmatpush3.bf16.msra.mxu0 %v2529_v7  ;;  %v2111_v14 = vld [vmem:[%s3160_s1] ss:$0 sm:$0xff]  ;;  %v2536_v42 = vld [vmem:[%s3159_s3 + $0x18] sm:$0xff]  }
  0x1b   : > { %2294 = vmatprep.subr.bf16.mxu0 %v2649_v8  ;;  %v2112_v16 = vld [vmem:[%s3161_s2] ss:$0 sm:$0xff]  ;;  %v2540_v7 = vld [vmem:[%s3141_s4 + $0x18] sm:$0xff]   ;;  %s3094_s2 = scalar_lea.hbm %s3151_s14, %s2217_s27  ;;  %s2033_s17 = scalar_lea.sflag [#allocation3], %s456_s21 }
  0x1c   : > { %s2110_s26 = sshll.u32 %s460_s25, 3  ;;  %s2651_s25 = smov [#allocation2]  }
  0x1d   : > { %s462_s18 = scalar_lea.vmem %s3158_s0, %s2110_s26  ;;  %s2109_s0 = sshll.u32 %s456_s21, 3 }
  0x1e   : > { %v2780_v0 = vld [vmem:[%s462_s18] sm:$0xff]  ;;  %2295 = vmatpush3.bf16.msra.mxu0 %v2530_v9  ;;  %s458_s28 = scalar_lea.vmem [#allocation2], %s2109_s0  ;;  %s2589_s26 = sshll.u32 %s2651_s25, 4  ;;  %s2590_s26 = int_to_ptr.vmem [resolvable:$false] %s2589_s26 }
  0x1f   : > { %v468_v1 = vsel %vm467_vm0, %v2780_v0, 0.0  ;;  %2300 = vmatprep.subr.bf16.mxu0 %v2649_v8  ;;  %s2046_s18 = sshll.u32 %s458_s28, 4  ;;  %s3096_s18 = int_to_ptr.vmem [resolvable:$true] %s2046_s18 }
  0x20   : > { %469 = vadd.xlane.f32.xlu0 %v468_v1  ;;  %s2585_s0 = scalar_lea.vmem %s3096_s18, 128  ;;  %p2592_p0 = scmp.lt.s32.totalorder %s3096_s18, %s2590_s26 }
  0x21   : > { %p2586_p11 = scmp.ne.s32.totalorder %s3096_s18, %s2585_s0 }
  0x23   : > { %p2587_p12 = pnand %p2586_p11, %p2765_p5 }
  0x25   : > { %p2588_p13 = pneg %p2587_p12 }
  0xad   : > { %v470_v2 = vpop.xlane.xlu0 %469 }
  0xae   : > { %v472_v3 = vmul.f32 0.03125, %v470_v2 }
  0xb0   : > { %v473_v4 = vsub.f32 %v2780_v0, %v472_v3 }
  0xb2   : > { %v474_v5 = vmul.f32 %v473_v4, %v473_v4 }
  0xb4   : > { %v475_v6 = vsel %vm467_vm0, %v474_v5, 0.0  ;;  %v2539_v5 = vld [vmem:[%s3141_s4 + $0x10] sm:$0xff]  }
  0xb5   : > { %476 = vadd.xlane.f32.xlu0 %v475_v6 }
 0x142   : > { %v477_v10 = vpop.xlane.xlu0 %476 }
 0x143   : > { %v478_v11 = vmul.f32 0.03125, %v477_v10 }
 0x145   : > { %v479_v12 = vadd.f32 1e-05, %v478_v11 }
 0x147   : > { %2563 = vrsqrt.f32 %v479_v12 }
 0x151   : > { %v2564_v13 = vpop.eup %2563 }
 0x152   : > { %v481_v15 = vmul.f32 %v2564_v13, %v473_v4 }
 0x154   : > { %v488_v17 = vmul.f32 %v2111_v14, %v481_v15 }
 0x156   : > { %v495_v18 = vadd.f32 %v2112_v16, %v488_v17 }
 0x158   : > { %v2809_v20 = vpack.c.bf16 %v495_v18, %v495_v18 }
 0x15a   : > { %2297 = vmatmul.mubr.msk.bf16.vlgmr.msra.gmra.mrb[0].mxu0 %vm467_vm0, %v2809_v20 }
 0x15b   : > { %2301 = vmatpush3.bf16.msra.mxu0 %v2531_v19  ;;  %2304 = vmatprep.mubr.msk.bf16.mxu0 %vm2650_vm1, %v2649_v8 }
 0x15c   : > { %2302 = vmatprep.subr.bf16.mxu0 %v2649_v8 }
 0x15f   : > { %2303 = vmatpush3.bf16.msra.mxu0 %v2532_v21 }
 0x160   : > { %2308 = vmatprep.subr.bf16.mxu0 %v2649_v8 }
 0x162   : > { %2305 = vmatmul.mubr.msk.bf16.vlgmr.msra.gmra.mrb[4].mxu0 %vm467_vm0, %v2809_v20 }
 0x163   : > { %2309 = vmatpush3.bf16.msra.mxu0 %v2533_v22  ;;  %2312 = vmatprep.mubr.msk.bf16.mxu0 %vm2650_vm1, %v2649_v8 }
 0x164   : > { %2310 = vmatprep.subr.bf16.mxu0 %v2649_v8 }
 0x167   : > { %2311 = vmatpush3.bf16.msra.mxu0 %v2534_v23 }
 0x168   : > { %2322 = vmatprep.subr.bf16.mxu0 %v2649_v8 }
 0x16a   : > { %2313 = vmatmul.mubr.msk.bf16.vlgmr.msra.gmra.mrb[8].mxu0 %vm467_vm0, %v2809_v20 }
 0x16b   : > { %2324 = vmatprep.mubr.msk.bf16.mxu0 %vm2650_vm1, %v2649_v8 }
 0x22d   : > { %v550_v24 = vpop.f32.mrb[0].mxu0 }
 0x22e   : > { %v2298_v25 = vpop.f32.mrb[1].mxu0  ;;  %v668_v36 = vpack.c.bf16 %v550_v24, %v550_v24 }
 0x22f   : > { %v553_v26 = vpop.f32.mrb[2].mxu0 }
 0x230   : > { %v2299_v27 = vpop.f32.mrb[3].mxu0 }
 0x235   : > { %v606_v28 = vpop.f32.mrb[4].mxu0 }
 0x236   : > { %v669_v29 = vpack.c.bf16 %v606_v28, %v606_v28  ;;  %v2306_v30 = vpop.f32.mrb[5].mxu0 }
 0x237   : > { %v609_v31 = vpop.f32.mrb[6].mxu0 }
 0x238   : > { %v2307_v32 = vpop.f32.mrb[7].mxu0  ;;  %v675_v33 = vsel %vm670_vm2, %v669_v29, 0  ;;  %v2147_v31 = vld [vmem:[%s3143_s6 + $0x4] sm:$0xf] }
 0x239   : > { %2317 = vmatpush3.bf16.xpose.msra.mxu1 %v675_v33  ;;  %v1064_v32 = vsel %vm733_vm3, %v2147_v31, 0  ;;  %v2547_v31 = vld [vmem:[%s3159_s3 + $0x30] sm:$0xff]  }
 0x23a   : > { %2328 = vmatprep.subr.bf16.mxu1 %v2649_v8 }
 0x23d   : > { %v662_v34 = vpop.f32.mrb[8].mxu0 }
 0x23e   : > { %v729_v37 = vpack.c.bf16 %v662_v34, %v662_v34  ;;  %v2314_v38 = vpop.f32.mrb[9].mxu0 }
 0x23f   : > { %v665_v39 = vpop.f32.mrb[10].mxu0 }
 0x240   : > { %v735_v40 = vsel %vm733_vm3, %v729_v37, 0  ;;  %v2315_v41 = vpop.f32.mrb[11].mxu0  ;;  %2319 = vmatmul.mubr.msk.bf16.vlgmr.msra.gmra.mrb[0].mxu1 %vm670_vm2, %v668_v36  ;;  %v2541_v39 = vld [vmem:[%s3141_s4 + $0x20] sm:$0xff]  }
 0x241   : > { %2323 = vmatpush3.bf16.msra.mxu0 %v735_v40  ;;  %2329 = vmatpush3.bf16.msra.mxu1 %v2535_v35  ;;  %v778_v35 = vld [vmem:[%s3143_s6] sm:$0xf]  ;;  %v2542_v41 = vld [vmem:[%s3141_s4 + $0x28] sm:$0xff]  }
 0x242   : > { %2330 = vmatprep.subr.bf16.mxu1 %v2649_v8  ;;  %2332 = vmatprep.mubr.msk.bf16.mxu1 %vm2650_vm1, %v2649_v8  ;;  %v1110_v38 = vsel %vm733_vm3, %v778_v35, 0  ;;  %v2550_v35 = vld [vmem:[%s3142_s5 + $0x38] sm:$0xff]  }
 0x243   : > { %2336 = vmatprep.subr.bf16.mxu0 %v2649_v8 }
 0x245   : > { %2331 = vmatpush3.bf16.msra.mxu1 %v2536_v42 }
 0x246   : > { %2344 = vmatprep.subr.bf16.mxu1 %v2649_v8 }
 0x248   : > { %2333 = vmatmul.mubr.msk.bf16.vlgmr.msra.gmra.mrb[4].mxu1 %vm467_vm0, %v2809_v20 }
 0x249   : > { %2345 = vmatpush3.bf16.msra.mxu1 %v2537_v43  ;;  %2348 = vmatprep.mubr.msk.bf16.mxu1 %vm2650_vm1, %v2649_v8  ;;  %v2543_v43 = vld [vmem:[%s3159_s3 + $0x20] sm:$0xff]  }
 0x24a   : > { %2346 = vmatprep.subr.bf16.mxu1 %v2649_v8 }
 0x24d   : > { %2347 = vmatpush3.bf16.msra.mxu1 %v2538_v44 }
 0x24e   : > { %2358 = vmatprep.subr.bf16.mxu1 %v2649_v8 }
 0x250   : > { %2349 = vmatmul.mubr.msk.bf16.vlgmr.msra.gmra.mrb[8].mxu1 %vm467_vm0, %v2809_v20 }
 0x251   : > { %2360 = vmatprep.mubr.msk.bf16.mxu1 %vm2650_vm1, %v2649_v8 }
 0x313   : > { %v711_v45 = vpop.f32.mrb[0].mxu1 }
 0x314   : > { %v2320_v46 = vpop.f32.mrb[1].mxu1  ;;  %v717_v47 = vsel %vm670_vm2, %v711_v45, -inf }
 0x315   : > { %718 = vmax.xlane.f32.xlu1 %v717_v47  ;;  %v714_v48 = vpop.f32.mrb[2].mxu1 }
 0x316   : > { %v2321_v49 = vpop.f32.mrb[3].mxu1  ;;  %v2544_v48 = vld [vmem:[%s3159_s3 + $0x28] sm:$0xff]  }
 0x31b   : > { %v830_v50 = vpop.f32.mrb[4].mxu1 }
 0x31c   : > { %v2334_v51 = vpop.f32.mrb[5].mxu1  ;;  %v950_v19 = vpack.c.bf16 %v830_v50, %v830_v50  ;;  %v2545_v50 = vld [vmem:[%s3142_s5 + $0x20] sm:$0xff]  }
 0x31d   : > { %v833_v52 = vpop.f32.mrb[6].mxu1 }
 0x31e   : > { %v2335_v53 = vpop.f32.mrb[7].mxu1 }
 0x323   : > { %v944_v54 = vpop.f32.mrb[8].mxu1 }
 0x324   : > { %v1010_v55 = vpack.c.bf16 %v944_v54, %v944_v54  ;;  %v2350_v56 = vpop.f32.mrb[9].mxu1  ;;  %v2546_v54 = vld [vmem:[%s3142_s5 + $0x28] sm:$0xff]  }
 0x325   : > { %v947_v57 = vpop.f32.mrb[10].mxu1 }
 0x326   : > { %v1015_v58 = vsel %vm733_vm3, %v1010_v55, 0  ;;  %v2351_v59 = vpop.f32.mrb[11].mxu1 }
 0x327   : > { %2359 = vmatpush3.bf16.msra.mxu1 %v1015_v58 }
 0x328   : > { %2370 = vmatprep.subr.bf16.mxu1 %v2649_v8 }
 0x3a2   : > { %v719_v60 = vpop.xlane.xlu1 %718 }
 0x3a3   : > { %v720_v61 = vsub.f32 %v711_v45, %v719_v60 }
 0x3a5   : > { %v721_v62 = vmul.f32 1.442695, %v720_v61 }
 0x3a7   : > { %2565 = vpow2.f32 %v721_v62 }
 0x3b1   : > { %v2566_v63 = vpop.eup %2565 }
 0x3b2   : > { %v723_v1 = vsel %vm670_vm2, %v2566_v63, 0.0 }
 0x3b3   : > { %724 = vadd.xlane.f32.xlu1 %v723_v1 }
 0x440   : > { %v725_v2 = vpop.xlane.xlu1 %724 }
 0x441   : > { %2567 = vrcp.f32 %v725_v2 }
 0x44b   : > { %v2568_v3 = vpop.eup %2567 }
 0x44c   : > { %v727_v4 = vmul.f32 %v2568_v3, %v2566_v63 }
 0x44e   : > { %v728_v6 = vpack.c.bf16 %v727_v4, %v727_v4 }
 0x450   : > { %2325 = vmatmul.mubr.msk.bf16.vlgmr.msra.gmra.mrb[12].mxu0 %vm670_vm2, %v728_v6 }
 0x451   : > { %2337 = vmatpush3.bf16.msra.mxu0 %v2539_v5  ;;  %2340 = vmatprep.mubr.msk.bf16.mxu0 %vm2650_vm1, %v2649_v8 }
 0x452   : > { %2338 = vmatprep.subr.bf16.mxu0 %v2649_v8 }
 0x455   : > { %2339 = vmatpush3.bf16.msra.mxu0 %v2540_v7 }
 0x456   : > { %2352 = vmatprep.subr.bf16.mxu0 %v2649_v8 }
 0x458   : > { %2341 = vmatmul.mubr.msk.bf16.vlgmr.msra.gmra.mrb[16].mxu0 %vm467_vm0, %v2809_v20 }
 0x459   : > { %2354 = vmatprep.mubr.msk.bf16.mxu0 %vm2650_vm1, %v2649_v8 }
 0x523   : > { %v771_v9 = vpop.f32.mrb[12].mxu0 }
 0x524   : > { %v2326_v10 = vpop.f32.mrb[13].mxu0  ;;  %v777_v40 = vpack.c.bf16 %v771_v9, %v771_v9 }
 0x525   : > { %v774_v11 = vpop.f32.mrb[14].mxu0 }
 0x526   : > { %v2327_v12 = vpop.f32.mrb[15].mxu0 }
 0x52b   : > { %v887_v13 = vpop.f32.mrb[16].mxu0 }
 0x52c   : > { %v951_v14 = vpack.c.bf16 %v887_v13, %v887_v13  ;;  %v2342_v15 = vpop.f32.mrb[17].mxu0 }
 0x52d   : > { %v890_v16 = vpop.f32.mrb[18].mxu0 }
 0x52e   : > { %v956_v17 = vsel %vm670_vm2, %v951_v14, 0  ;;  %v2343_v18 = vpop.f32.mrb[19].mxu0 }
 0x52f   : > { %2353 = vmatpush3.bf16.xpose.msra.mxu0 %v956_v17 }
 0x530   : > { %2364 = vmatprep.subr.bf16.mxu0 %v2649_v8 }
 0x536   : > { %2355 = vmatmul.mubr.msk.bf16.vlgmr.msra.gmra.mrb[20].mxu0 %vm670_vm2, %v950_v19 }
 0x537   : > { %2366 = vmatprep.mubr.msk.bf16.mxu0 %vm2650_vm1, %v2649_v8  ;;  %2365 = vmatpush3.bf16.msra.mxu0 %v1064_v32 }
 0x538   : > { %2376 = vmatprep.subr.bf16.mxu0 %v2649_v8 }
 0x609   : > { %v992_v21 = vpop.f32.mrb[20].mxu0 }
 0x60a   : > { %v2356_v22 = vpop.f32.mrb[21].mxu0  ;;  %v998_v23 = vsel %vm670_vm2, %v992_v21, -inf }
 0x60b   : > { %999 = vmax.xlane.f32.xlu0 %v998_v23  ;;  %v995_v24 = vpop.f32.mrb[22].mxu0 }
 0x60c   : > { %v2357_v25 = vpop.f32.mrb[23].mxu0 }
 0x698   : > { %v1000_v26 = vpop.xlane.xlu0 %999 }
 0x699   : > { %v1001_v27 = vsub.f32 %v992_v21, %v1000_v26  ;;  %v2173_v26 = vld [vmem:[%s3143_s6 + $0x8] sm:$0xf] }
 0x69b   : > { %v1002_v28 = vmul.f32 1.442695, %v1001_v27  ;;  %v1437_v27 = vsel %vm733_vm3, %v2173_v26, 0 }
 0x69d   : > { %2569 = vpow2.f32 %v1002_v28 }
 0x6a7   : > { %v2570_v29 = vpop.eup %2569 }
 0x6a8   : > { %v1004_v30 = vsel %vm670_vm2, %v2570_v29, 0.0 }
 0x6a9   : > { %1005 = vadd.xlane.f32.xlu1 %v1004_v30 }
 0x736   : > { %v1006_v33 = vpop.xlane.xlu1 %1005 }
 0x737   : > { %2571 = vrcp.f32 %v1006_v33  ;;  %v2548_v33 = vld [vmem:[%s3159_s3 + $0x38] sm:$0xff]   ;;  %s2591_s3 = scalar_lea.vmem %s2590_s26, 256 }
 0x738   : > { %p2593_p1 = scmp.lt.s32.totalorder %s2591_s3, %s2585_s0 }
 0x73a   : > { %p2594_p2 = por %p2593_p1, %p2592_p0 }
 0x73c   : > { %p2595_p3 = pnand %p2594_p2, %p2588_p13 }
 0x741   : > { %v2572_v34 = vpop.eup %2571 }
 0x742   : > { %v1008_v36 = vmul.f32 %v2572_v34, %v2570_v29  ;;  %v2549_v34 = vld [vmem:[%s3142_s5 + $0x30] sm:$0xff]  }
 0x744   : > { %v1009_v37 = vpack.c.bf16 %v1008_v36, %v1008_v36 }
 0x746   : > { %2361 = vmatmul.mubr.msk.bf16.vlgmr.msra.gmra.mrb[12].mxu1 %vm670_vm2, %v1009_v37  ;;  %v2551_v37 = vld [vmem:[%s3141_s4 + $0x30] sm:$0xff]  }
 0x747   : > { %2371 = vmatpush3.bf16.msra.mxu1 %v1110_v38  ;;  %2372 = vmatprep.mubr.msk.bf16.mxu1 %vm2650_vm1, %v2649_v8 }
 0x748   : > { %2384 = vmatprep.subr.bf16.mxu1 %v2649_v8 }
 0x74e   : > { %2373 = vmatmul.mubr.msk.bf16.vlgmr.msra.gmra.mrb[16].mxu1 %vm670_vm2, %v777_v40 }
 0x74f   : > { %2385 = vmatpush3.bf16.msra.mxu1 %v2541_v39  ;;  %2388 = vmatprep.mubr.msk.bf16.mxu1 %vm2650_vm1, %v2649_v8 }
 0x750   : > { %2386 = vmatprep.subr.bf16.mxu1 %v2649_v8 }
 0x753   : > { %2387 = vmatpush3.bf16.msra.mxu1 %v2542_v41 }
 0x754   : > { %2400 = vmatprep.subr.bf16.mxu1 %v2649_v8 }
 0x756   : > { %2389 = vmatmul.mubr.msk.bf16.vlgmr.msra.gmra.mrb[20].mxu1 %vm467_vm0, %v2809_v20 }
 0x757   : > { %2402 = vmatprep.mubr.msk.bf16.mxu1 %vm2650_vm1, %v2649_v8 }
 0x819   : > { %v1051_v42 = vpop.f32.mrb[12].mxu1 }
 0x81a   : > { %v1057_v44 = vpack.c.bf16 %v1051_v42, %v1051_v42  ;;  %v2362_v45 = vpop.f32.mrb[13].mxu1  ;;  %v2552_v42 = vld [vmem:[%s3141_s4 + $0x38] sm:$0xff]  }
 0x81b   : > { %v1054_v46 = vpop.f32.mrb[14].mxu1 }
 0x81c   : > { %v2363_v47 = vpop.f32.mrb[15].mxu1  ;;  %2367 = vmatmul.mubr.msk.bf16.vlgmr.msra.gmra.mrb[24].mxu0 %vm670_vm2, %v1057_v44 }
 0x81d   : > { %2377 = vmatpush3.bf16.msra.mxu0 %v2543_v43  ;;  %2380 = vmatprep.mubr.msk.bf16.mxu0 %vm2650_vm1, %v2649_v8 }
 0x81e   : > { %2378 = vmatprep.subr.bf16.mxu0 %v2649_v8 }
 0x821   : > { %v1146_v49 = vpop.f32.mrb[16].mxu1  ;;  %2379 = vmatpush3.bf16.msra.mxu0 %v2544_v48 }
 0x822   : > { %v2374_v51 = vpop.f32.mrb[17].mxu1  ;;  %2392 = vmatprep.subr.bf16.mxu0 %v2649_v8 }
 0x823   : > { %v1149_v52 = vpop.f32.mrb[18].mxu1 }
 0x824   : > { %v2375_v53 = vpop.f32.mrb[19].mxu1  ;;  %2381 = vmatmul.mubr.msk.bf16.vlgmr.msra.gmra.mrb[28].mxu0 %vm467_vm0, %v2809_v20 }
 0x825   : > { %2393 = vmatpush3.bf16.msra.mxu0 %v2545_v50  ;;  %2396 = vmatprep.mubr.msk.bf16.mxu0 %vm2650_vm1, %v2649_v8 }
 0x826   : > { %2394 = vmatprep.subr.bf16.mxu0 %v2649_v8 }
 0x829   : > { %v1260_v55 = vpop.f32.mrb[20].mxu1  ;;  %2395 = vmatpush3.bf16.msra.mxu0 %v2546_v54 }
 0x82a   : > { %v1324_v56 = vpack.c.bf16 %v1260_v55, %v1260_v55  ;;  %v2390_v57 = vpop.f32.mrb[21].mxu1  ;;  %2406 = vmatprep.subr.bf16.mxu0 %v2649_v8 }
 0x82b   : > { %v1263_v58 = vpop.f32.mrb[22].mxu1 }
 0x82c   : > { %v1329_v59 = vsel %vm670_vm2, %v1324_v56, 0  ;;  %v2391_v60 = vpop.f32.mrb[23].mxu1  ;;  %2397 = vmatmul.mubr.msk.bf16.vlgmr.msra.gmra.mrb[32].mxu0 %vm467_vm0, %v2809_v20 }
 0x82d   : > { %2401 = vmatpush3.bf16.xpose.msra.mxu1 %v1329_v59  ;;  %2408 = vmatprep.mubr.msk.bf16.mxu0 %vm2650_vm1, %v2649_v8 }
 0x82e   : > { %2412 = vmatprep.subr.bf16.mxu1 %v2649_v8 }
 0x8ef   : > { %v1100_v61 = vpop.f32.mrb[24].mxu0 }
 0x8f0   : > { %v2950_v62 = vadd.f32 %v1146_v49, %v1100_v61  ;;  %v2368_v63 = vpop.f32.mrb[25].mxu0 }
 0x8f1   : > { %v1103_v1 = vpop.f32.mrb[26].mxu0 }
 0x8f2   : > { %v2369_v2 = vpop.f32.mrb[27].mxu0 }
 0x8f7   : > { %v1203_v3 = vpop.f32.mrb[28].mxu0 }
 0x8f8   : > { %v1323_v4 = vpack.c.bf16 %v1203_v3, %v1203_v3  ;;  %v2382_v5 = vpop.f32.mrb[29].mxu0 }
 0x8f9   : > { %v1206_v6 = vpop.f32.mrb[30].mxu0 }
 0x8fa   : > { %v2383_v7 = vpop.f32.mrb[31].mxu0  ;;  %2403 = vmatmul.mubr.msk.bf16.vlgmr.msra.gmra.mrb[24].mxu1 %vm670_vm2, %v1323_v4 }
 0x8fb   : > { %2414 = vmatprep.mubr.msk.bf16.mxu1 %vm2650_vm1, %v2649_v8  ;;  %2413 = vmatpush3.bf16.msra.mxu1 %v1437_v27  ;;  %v2200_v27 = vld [vmem:[%s3144_s7] ss:$0 sm:$0xff] }
 0x8fc   : > { %2426 = vmatprep.subr.bf16.mxu1 %v2649_v8 }
 0x8ff   : > { %v1317_v9 = vpop.f32.mrb[32].mxu0 }
 0x900   : > { %v1383_v10 = vpack.c.bf16 %v1317_v9, %v1317_v9  ;;  %v2398_v11 = vpop.f32.mrb[33].mxu0 }
 0x901   : > { %v1320_v12 = vpop.f32.mrb[34].mxu0 }
 0x902   : > { %v1388_v13 = vsel %vm733_vm3, %v1383_v10, 0  ;;  %v2399_v14 = vpop.f32.mrb[35].mxu0  ;;  %v2198_v12 = vld [vmem:[%s3143_s6 + $0xc] sm:$0xf] }
 0x903   : > { %2407 = vmatpush3.bf16.msra.mxu0 %v1388_v13  ;;  %v1765_v13 = vsel %vm733_vm3, %v2198_v12, 0 }
 0x904   : > { %2418 = vmatprep.subr.bf16.mxu0 %v2649_v8 }
 0x9cd   : > { %v1365_v15 = vpop.f32.mrb[24].mxu1 }
 0x9ce   : > { %v2404_v16 = vpop.f32.mrb[25].mxu1  ;;  %v1371_v17 = vsel %vm670_vm2, %v1365_v15, -inf }
 0x9cf   : > { %1372 = vmax.xlane.f32.xlu0 %v1371_v17  ;;  %v1368_v18 = vpop.f32.mrb[26].mxu1 }
 0x9d0   : > { %v2405_v19 = vpop.f32.mrb[27].mxu1 }
 0xa5c   : > { %v1373_v21 = vpop.xlane.xlu0 %1372 }
 0xa5d   : > { %v1374_v22 = vsub.f32 %v1365_v15, %v1373_v21 }
 0xa5f   : > { %v1375_v23 = vmul.f32 1.442695, %v1374_v22 }
 0xa61   : > { %2573 = vpow2.f32 %v1375_v23 }
 0xa6b   : > { %v2574_v24 = vpop.eup %2573 }
 0xa6c   : > { %v1377_v25 = vsel %vm670_vm2, %v2574_v24, 0.0 }
 0xa6d   : > { %1378 = vadd.xlane.f32.xlu1 %v1377_v25 }
 0xafa   : > { %v1379_v28 = vpop.xlane.xlu1 %1378 }
 0xafb   : > { %2575 = vrcp.f32 %v1379_v28 }
 0xb05   : > { %v2576_v29 = vpop.eup %2575 }
 0xb06   : > { %v1381_v30 = vmul.f32 %v2576_v29, %v2574_v24 }
 0xb08   : > { %v1382_v32 = vpack.c.bf16 %v1381_v30, %v1381_v30 }
 0xb0a   : > { %2409 = vmatmul.mubr.msk.bf16.vlgmr.msra.gmra.mrb[36].mxu0 %vm670_vm2, %v1382_v32 }
 0xb0b   : > { %2419 = vmatpush3.bf16.msra.mxu0 %v2547_v31  ;;  %2422 = vmatprep.mubr.msk.bf16.mxu0 %vm2650_vm1, %v2649_v8 }
 0xb0c   : > { %2420 = vmatprep.subr.bf16.mxu0 %v2649_v8 }
 0xb0f   : > { %2421 = vmatpush3.bf16.msra.mxu0 %v2548_v33 }
 0xb10   : > { %2434 = vmatprep.subr.bf16.mxu0 %v2649_v8 }
 0xb12   : > { %2423 = vmatmul.mubr.msk.bf16.vlgmr.msra.gmra.mrb[40].mxu0 %vm467_vm0, %v2809_v20 }
 0xb13   : > { %2435 = vmatpush3.bf16.msra.mxu0 %v2549_v34  ;;  %2438 = vmatprep.mubr.msk.bf16.mxu0 %vm2650_vm1, %v2649_v8 }
 0xb14   : > { %2436 = vmatprep.subr.bf16.mxu0 %v2649_v8 }
 0xb17   : > { %2437 = vmatpush3.bf16.msra.mxu0 %v2550_v35 }
 0xb18   : > { %2448 = vmatprep.subr.bf16.mxu0 %v2649_v8 }
 0xb1a   : > { %2439 = vmatmul.mubr.msk.bf16.vlgmr.msra.gmra.mrb[44].mxu0 %vm467_vm0, %v2809_v20 }
 0xb1b   : > { %2450 = vmatprep.mubr.msk.bf16.mxu0 %vm2650_vm1, %v2649_v8 }
 0xbdd   : > { %v1424_v36 = vpop.f32.mrb[36].mxu0 }
 0xbde   : > { %v1430_v38 = vpack.c.bf16 %v1424_v36, %v1424_v36  ;;  %v2410_v39 = vpop.f32.mrb[37].mxu0 }
 0xbdf   : > { %v1427_v40 = vpop.f32.mrb[38].mxu0  ;;  %v2555_v39 = vld [vmem:[%s3149_s12] sm:$0xff]  }
 0xbe0   : > { %v2411_v41 = vpop.f32.mrb[39].mxu0  ;;  %2415 = vmatmul.mubr.msk.bf16.vlgmr.msra.gmra.mrb[28].mxu1 %vm670_vm2, %v1430_v38  ;;  %v2553_v38 = vld [vmem:[%s3147_s10] sm:$0xff]   ;;  %v2556_v40 = vld [vmem:[%s3149_s12 + $0x8] sm:$0xff]  }
 0xbe1   : > { %2427 = vmatpush3.bf16.msra.mxu1 %v2551_v37  ;;  %2430 = vmatprep.mubr.msk.bf16.mxu1 %vm2650_vm1, %v2649_v8  ;;  %v2557_v41 = vld [vmem:[%s3149_s12 + $0x10] sm:$0xff]  }
 0xbe2   : > { %2428 = vmatprep.subr.bf16.mxu1 %v2649_v8 }
 0xbe5   : > { %v1531_v43 = vpop.f32.mrb[40].mxu0  ;;  %2429 = vmatpush3.bf16.msra.mxu1 %v2552_v42 }
 0xbe6   : > { %v2424_v44 = vpop.f32.mrb[41].mxu0  ;;  %2442 = vmatprep.subr.bf16.mxu1 %v2649_v8  ;;  %v1651_v1 = vpack.c.bf16 %v1531_v43, %v1531_v43 }
 0xbe7   : > { %v1534_v45 = vpop.f32.mrb[42].mxu0 }
 0xbe8   : > { %v2425_v46 = vpop.f32.mrb[43].mxu0  ;;  %2431 = vmatmul.mubr.msk.bf16.vlgmr.msra.gmra.mrb[32].mxu1 %vm467_vm0, %v2809_v20 }
 0xbe9   : > { %2444 = vmatprep.mubr.msk.bf16.mxu1 %vm2650_vm1, %v2649_v8  ;;  %v2201_v46 = vld [vmem:[%s3145_s8] ss:$0 sm:$0xff] }
 0xbed   : > { %v1645_v47 = vpop.f32.mrb[44].mxu0 }
 0xbee   : > { %v1711_v48 = vpack.c.bf16 %v1645_v47, %v1645_v47  ;;  %v2440_v49 = vpop.f32.mrb[45].mxu0 }
 0xbef   : > { %v1648_v50 = vpop.f32.mrb[46].mxu0 }
 0xbf0   : > { %v1716_v51 = vsel %vm733_vm3, %v1711_v48, 0  ;;  %v2441_v52 = vpop.f32.mrb[47].mxu0  ;;  %v2202_v48 = vld [vmem:[%s3146_s9] ss:$0 sm:$0xff] }
 0xbf1   : > { %2449 = vmatpush3.bf16.msra.mxu0 %v1716_v51  ;;  %v2558_v52 = vld [vmem:[%s3149_s12 + $0x18] sm:$0xff]  }
 0xbf2   : > { %2460 = vmatprep.subr.bf16.mxu0 %v2649_v8 }
 0xcb3   : > { %v1473_v53 = vpop.f32.mrb[28].mxu1 }
 0xcb4   : > { %v1479_v54 = vadd.f32 %v1473_v53, %v2950_v62  ;;  %v2416_v55 = vpop.f32.mrb[29].mxu1  ;;  %v2559_v53 = vld [vmem:[%s3149_s12 + $0x20] sm:$0xff]  }
 0xcb5   : > { %v1476_v56 = vpop.f32.mrb[30].mxu1  ;;  %v2561_v55 = vld [vmem:[%s3149_s12 + $0x30] sm:$0xff]  }
 0xcb6   : > { %v2417_v57 = vpop.f32.mrb[31].mxu1  ;;  %v2562_v56 = vld [vmem:[%s3149_s12 + $0x38] sm:$0xff]  }
 0xcb7   : > { %v2203_v57 = vld [vmem:[%s3148_s11] ss:$0 sm:$0xff] }
 0xcbb   : > { %v1588_v20 = vpop.f32.mrb[32].mxu1 }
 0xcbc   : > { %v1652_v58 = vpack.c.bf16 %v1588_v20, %v1588_v20  ;;  %v2432_v59 = vpop.f32.mrb[33].mxu1 }
 0xcbd   : > { %v1591_v60 = vpop.f32.mrb[34].mxu1 }
 0xcbe   : > { %v1657_v61 = vsel %vm670_vm2, %v1652_v58, 0  ;;  %v2433_v63 = vpop.f32.mrb[35].mxu1 }
 0xcbf   : > { %2443 = vmatpush3.bf16.xpose.msra.mxu1 %v1657_v61 }
 0xcc0   : > { %2454 = vmatprep.subr.bf16.mxu1 %v2649_v8 }
 0xcc6   : > { %2445 = vmatmul.mubr.msk.bf16.vlgmr.msra.gmra.mrb[36].mxu1 %vm670_vm2, %v1651_v1 }
 0xcc7   : > { %2456 = vmatprep.mubr.msk.bf16.mxu1 %vm2650_vm1, %v2649_v8  ;;  %2455 = vmatpush3.bf16.msra.mxu1 %v1765_v13 }
 0xcc8   : > { %2468 = vmatprep.subr.bf16.mxu1 %v2649_v8 }
 0xd99   : > { %v1693_v62 = vpop.f32.mrb[36].mxu1 }
 0xd9a   : > { %v2446_v2 = vpop.f32.mrb[37].mxu1  ;;  %v1699_v3 = vsel %vm670_vm2, %v1693_v62, -inf }
 0xd9b   : > { %1700 = vmax.xlane.f32.xlu0 %v1699_v3  ;;  %v1696_v4 = vpop.f32.mrb[38].mxu1 }
 0xd9c   : > { %v2447_v5 = vpop.f32.mrb[39].mxu1  ;;  %v2207_v4 = vld [vmem:[%s3150_s13] ss:$0 sm:$0xff] }
 0xe28   : > { %v1701_v6 = vpop.xlane.xlu0 %1700 }
 0xe29   : > { %v1702_v7 = vsub.f32 %v1693_v62, %v1701_v6 }
 0xe2b   : > { %v1703_v9 = vmul.f32 1.442695, %v1702_v7 }
 0xe2d   : > { %2577 = vpow2.f32 %v1703_v9 }
 0xe37   : > { %v2578_v10 = vpop.eup %2577 }
 0xe38   : > { %v1705_v11 = vsel %vm670_vm2, %v2578_v10, 0.0 }
 0xe39   : > { %1706 = vadd.xlane.f32.xlu1 %v1705_v11 }
 0xec6   : > { %v1707_v14 = vpop.xlane.xlu1 %1706 }
 0xec7   : > { %2579 = vrcp.f32 %v1707_v14 }
 0xed1   : > { %v2580_v15 = vpop.eup %2579 }
 0xed2   : > { %v1709_v16 = vmul.f32 %v2580_v15, %v2578_v10 }
 0xed4   : > { %v1710_v17 = vpack.c.bf16 %v1709_v16, %v1709_v16 }
 0xed6   : > { %2451 = vmatmul.mubr.msk.bf16.vlgmr.msra.gmra.mrb[48].mxu0 %vm670_vm2, %v1710_v17 }
 0xed7   : > { %2464 = vmatprep.mubr.msk.bf16.mxu0 %vm2650_vm1, %v2649_v8  ;;  %2461 = vmatpush3.bf16.msra.mxu0 %v2553_v38 }
 0xed8   : > { %2462 = vmatprep.subr.bf16.mxu0 %v2649_v8 }
 0xfa9   : > { %v1752_v18 = vpop.f32.mrb[48].mxu0 }
 0xfaa   : > { %v1758_v19 = vpack.c.bf16 %v1752_v18, %v1752_v18  ;;  %v2452_v21 = vpop.f32.mrb[49].mxu0 }
 0xfab   : > { %v1755_v22 = vpop.f32.mrb[50].mxu0 }
 0xfac   : > { %v2453_v23 = vpop.f32.mrb[51].mxu0  ;;  %2457 = vmatmul.mubr.msk.bf16.vlgmr.msra.gmra.mrb[40].mxu1 %vm670_vm2, %v1758_v19 }
 0xfad   : > { %2484 = vmatprep.mubr.msk.bf16.mxu1 %vm2650_vm1, %v2649_v8  ;;  %2469 = vmatpush3.bf16.msra.mxu1 %v2555_v39 }
 0xfae   : > { %2470 = vmatprep.subr.bf16.mxu1 %v2649_v8 }
 0xfb1   : > { %2471 = vmatpush3.bf16.msra.mxu1 %v2556_v40 }
 0xfb2   : > { %2472 = vmatprep.subr.bf16.mxu1 %v2649_v8 }
 0xfb5   : > { %2473 = vmatpush3.bf16.msra.mxu1 %v2557_v41 }
 0xfb6   : > { %2474 = vmatprep.subr.bf16.mxu1 %v2649_v8 }
 0xfb9   : > { %2475 = vmatpush3.bf16.msra.mxu1 %v2558_v52 }
 0xfba   : > { %2476 = vmatprep.subr.bf16.mxu1 %v2649_v8 }
 0xfbd   : > { %2477 = vmatpush3.bf16.msra.mxu1 %v2559_v53 }
 0xfbe   : > { %2478 = vmatprep.subr.bf16.mxu1 %v2649_v8 }
0x107f   : > { %v1801_v24 = vpop.f32.mrb[40].mxu1 }
0x1080   : > { %v1807_v25 = vadd.f32 %v1801_v24, %v1479_v54  ;;  %v2458_v26 = vpop.f32.mrb[41].mxu1  ;;  %v2560_v54 = vld [vmem:[%s3149_s12 + $0x28] sm:$0xff]  }
0x1081   : > { %v1804_v28 = vpop.f32.mrb[42].mxu1  ;;  %2479 = vmatpush3.bf16.msra.mxu1 %v2560_v54 }
0x1082   : > { %v1808_v29 = vadd.f32 %v1807_v25, %v2780_v0  ;;  %v2459_v30 = vpop.f32.mrb[43].mxu1  ;;  %v2554_v0 = vld [vmem:[%s3147_s10 + $0x8] sm:$0xff]   ;;  %2480 = vmatprep.subr.bf16.mxu1 %v2649_v8 }
0x1083   : > { %2463 = vmatpush3.bf16.msra.mxu0 %v2554_v0 }
0x1084   : > { %v3031_v31 = vadd.f32 %v2200_v27, %v1808_v29 }
0x1085   : > { %2481 = vmatpush3.bf16.msra.mxu1 %v2561_v55 }
0x1086   : > { %v1819_v32 = vsel %vm467_vm0, %v3031_v31, 0.0  ;;  %2482 = vmatprep.subr.bf16.mxu1 %v2649_v8 }
0x1087   : > { %1820 = vadd.xlane.f32.xlu0 %v1819_v32 }
0x1089   : > { %2483 = vmatpush3.bf16.msra.mxu1 %v2562_v56 }
0x1114   : > { %v1821_v33 = vpop.xlane.xlu0 %1820 }
0x1115   : > { %v1822_v34 = vmul.f32 0.03125, %v1821_v33 }
0x1117   : > { %v1823_v35 = vsub.f32 %v3031_v31, %v1822_v34 }
0x1119   : > { %v1824_v36 = vmul.f32 %v1823_v35, %v1823_v35 }
0x111b   : > { %v1825_v37 = vsel %vm467_vm0, %v1824_v36, 0.0 }
0x111c   : > { %1826 = vadd.xlane.f32.xlu1 %v1825_v37 }
0x11a9   : > { %v1827_v42 = vpop.xlane.xlu1 %1826 }
0x11aa   : > { %v1828_v43 = vmul.f32 0.03125, %v1827_v42 }
0x11ac   : > { %v1829_v44 = vadd.f32 1e-05, %v1828_v43 }
0x11ae   : > { %2581 = vrsqrt.f32 %v1829_v44 }
0x11b8   : > { %v2582_v45 = vpop.eup %2581 }
0x11b9   : > { %v1831_v47 = vmul.f32 %v2582_v45, %v1823_v35 }
0x11bb   : > { %v1838_v49 = vmul.f32 %v2201_v46, %v1831_v47 }
0x11bd   : > { %v1845_v50 = vadd.f32 %v2202_v48, %v1838_v49 }
0x11bf   : > { %v1846_v51 = vpack.c.bf16 %v1845_v50, %v1845_v50 }
0x11c1   : > { %2465 = vmatmul.mubr.msk.bf16.vlgmr.msra.gmra.mrb[52].mxu0 %vm467_vm0, %v1846_v51 }
0x1294   : > { %v1907_v20 = vpop.f32.mrb[52].mxu0 }
0x1295   : > { %v1908_v58 = vadd.f32 %v2203_v57, %v1907_v20  ;;  %v2466_v59 = vpop.f32.mrb[53].mxu0 }
0x1296   : > { %v1910_v60 = vpop.f32.mrb[54].mxu0 }
0x1297   : > { %v1914_v61 = vmul.f32 0.70710677, %v1908_v58  ;;  %v2467_v63 = vpop.f32.mrb[55].mxu0  ;;  %v1913_v8 = vmul.f32 0.5, %v1908_v58 }
0x1299   : > { %2583 = verf.f32 %v1914_v61 }
0x12a3   : > { %v2584_v1 = vpop.eup %2583 }
0x12a4   : > { %v1916_v62 = vadd.f32 1.0, %v2584_v1 }
0x12a6   : > { %v1917_v2 = vmul.f32 %v1916_v62, %v1913_v8 }
0x12a8   : > { %v1918_v3 = vpack.c.bf16 %v1917_v2, %v1917_v2 }
0x12aa   : > { %2485 = vmatmul.mubr.bf16.vlgmr.msra.gmra.mrb[44].mxu1 %v1918_v3 }
0x137d   : > { %v2024_v5 = vpop.f32.mrb[44].mxu1 }
0x137e   : > { %v2025_v6 = vadd.f32 %v2207_v4, %v2024_v5  ;;  %v2486_v7 = vpop.f32.mrb[45].mxu1 }
0x137f   : > { %v2027_v9 = vpop.f32.mrb[46].mxu1 }
0x1380   : > { %v2030_v10 = vadd.f32 %v2025_v6, %v3031_v31  ;;  %v2487_v11 = vpop.f32.mrb[47].mxu1 }
0x1382   : > { %2031 = vst.msk [vmem:[%s458_s28] sm:$0xff] %vm467_vm0, %v2030_v10 }
0x1383   : > { %2598 = shalt.err (!%p2595_p3)
}
0x1384   : > { %s2599_s1 = scalar_lea.hbm %s3094_s2, 128  ;;  %s2603_s28 = scalar_lea.hbm %s3151_s14, 256 }
0x1385   : > { %p2600_p4 = scmp.ne.s32.totalorder %s3094_s2, %s2599_s1  ;;  %p2604_p9 = scmp.lt.u32.totalorder %s3094_s2, %s3151_s14 }
0x1386   : > { %p2605_p10 = scmp.lt.u32.totalorder %s2603_s28, %s2599_s1  ;;  %p2607_p12 = scmp.lt.u32.totalorder %s2599_s1, %s3094_s2 }
0x1387   : > { %p2601_p7 = pnand %p2600_p4, %p2765_p5 }
0x1388   : > { %p2606_p11 = por %p2605_p10, %p2604_p9 }
0x1389   : > { %p2602_p8 = pneg %p2601_p7 }
0x138a   : > { %p2608_p13 = por %p2607_p12, %p2606_p11 }
0x138c   : > { %p2609_p0 = pnand %p2608_p13, %p2602_p8 }
0x138e   : > { %2612 = shalt.err (!%p2609_p0)
}
0x138f   : > { %2488 = dma.vmem_to_hbm [thread:$0]  (%p2765_p5), %s3096_s18, 128, %s3094_s2, %s2033_s17  }
0x1390 PF: > { %p2494_p1 = scmp.ge.s32.totalorder %s2647_s16, 2  ;;  %s2058_s3 = sand.u32 1, %s2635_s29  }
0x1391   : > { %s2059_s0 = scalar_lea.sflag [#allocation3], %s2058_s3 }
0x1392   : > { %p2491_p2 = pnand %p2494_p1, %p2769_p6 }
0x1394   : > { %2630 = dma.done.wait (!%p2491_p2), %s2059_s0, 128  }
0x1395   : > { %2632 = vsyncadd (!%p2491_p2), %s2059_s0, 4294967168  ;;  %p24_p3 = scmp.ge.s32.totalorder %s2752_s19, 4   ;;  %s3162_s29 = smov %s2639_s30 }
0x1396   : > { %s3163_s30 = smov %s2643_s15  ;;  %s3164_s15 = smov %s2763_s22 }
0x1397   : > { %s3165_s16 = smov %s2752_s19  ;;  %26 = sbr.rel (!%p24_p3) target bundleno = 8 (0x8), region = 123 }
0x139e   :  { %2064 = vsyncpa [#allocation3], 1 }
0x139f   :  { %2066 = vsyncpa [#allocation3 + $0x1], 1 }

</bundles_post_ra>
